<compile_context>
chip_gen: v7x
topology: tpu7x:2x2x1
jax: 0.10.0
libtpu: 0.0.40
codegen_flags: <defaults>
</compile_context>

<pallas_src>
import functools

import jax
import jax.numpy as jnp
from jax.experimental import pallas as pl
from jax.experimental.pallas import tpu as pltpu

LN_EPS = 1e-5  # torch.nn.LayerNorm default


def _elementwise_dtype_for_backend(compute_dtype):
    """bf16 elementwise only where the VPU is bf16-capable (v6e/v7x)."""
    try:
        kind = jax.devices()[0].device_kind.lower()
    except Exception:  # pragma: no cover - conservative fallback
        return compute_dtype
    if any(t in kind for t in ("v2", "v3", "v4", "v5")):
        return jnp.float32          # no bf16 VPU: keep elementwise math in f32
    return compute_dtype


def _ln_relu(x_f32, gamma_ref, beta_ref, out_dtype):
    """LayerNorm -> affine -> ReLU.

    One-pass f32 statistics (E[x], E[x^2]) from a single read of x (no xc
    materialization / shorter live ranges); normalize, affine and ReLU run in
    gamma's dtype (bf16 on v6e/v7x, f32 on v5e); rsqrt goes to the EUP.
    """
    edt = gamma_ref.dtype
    mu = jnp.mean(x_f32, axis=-1, keepdims=True)
    mu2 = jnp.mean(x_f32 * x_f32, axis=-1, keepdims=True)
    var = jnp.maximum(mu2 - mu * mu, 0.0)     # guard tiny negative rounding
    inv = jax.lax.rsqrt(var + LN_EPS)
    xn = (x_f32.astype(edt) - mu.astype(edt)) * inv.astype(edt)
    y = xn * gamma_ref[...] + beta_ref[...]
    return jnp.maximum(y, 0.0).astype(out_dtype)


def _ddi_mlp_body(fuse_fc1, *refs):
    if fuse_fc1:
        (z_ref, w1_ref, b1_ref, g1_ref, be1_ref,
         w2_ref, b2_ref, g2_ref, be2_ref, w3sel_ref, o_ref) = refs
        # Single (tile_m, 2D) @ (2D, H1) matmul (D < 256: fills the MXU K dim).
        h = jnp.dot(z_ref[...], w1_ref[...], preferred_element_type=jnp.float32)
    else:
        (zh_ref, zt_ref, w1h_ref, w1t_ref, b1_ref, g1_ref, be1_ref,
         w2_ref, b2_ref, g2_ref, be2_ref, w3sel_ref, o_ref) = refs
        # Split-w1 form (D >= 256): concat([z_h, z_t]) is never materialized.
        h = (jnp.dot(zh_ref[...], w1h_ref[...], preferred_element_type=jnp.float32)
             + jnp.dot(zt_ref[...], w1t_ref[...], preferred_element_type=jnp.float32))

    # fc1 bias (f32 on the accumulator) -> ln1 -> ReLU.  Dropout(p) is identity
    # in eval, so it is omitted.
    h = _ln_relu(h + b1_ref[...], g1_ref, be1_ref, w2_ref.dtype)

    # layers[0..3]: Linear -> LayerNorm -> ReLU -> Dropout(0).
    h = jnp.dot(h, w2_ref[...], preferred_element_type=jnp.float32) + b2_ref[...]
    h = _ln_relu(h, g2_ref, be2_ref, w3sel_ref.dtype)

    # out_fc fused with the per-row label gather: VPU multiply against the
    # pre-gathered column w3[:, label], f32 lane reduction (XLU).
    prod = h * w3sel_ref[...]
    sel = jnp.sum(prod.astype(jnp.float32), axis=-1)        # (tile_m,)
    # Lane-dense store: unmasked (1, 1, tile_m) row instead of a (tile_m, 1)
    # masked 1-lane column.
    o_ref[...] = sel[None, None, :].astype(o_ref.dtype)


def _make_kernel(fuse_fc1):
    def kernel(*refs):
        _ddi_mlp_body(fuse_fc1, *refs)
    return kernel


def simple_ddi_forward(z_mols, h_inds, t_inds, labels, params, *,
                       tile_m=256, compute_dtype=jnp.bfloat16):
    """SimpleDDI.forward starting from graph features z_mols.

    z_mols: (num_mols, feature_dim) f32; h_inds/t_inds/labels: (P,) int32.
    Returns (P,) float32 = mlp(concat(z_h, z_t))[arange(P), labels].

    compute_dtype=bf16 is the production path (MXU-native on all generations);
    the f32 path is for exactness testing only.
    """
    (w1, b1, g1, be1, w2, b2, g2, be2, w3, b3) = params
    P = labels.shape[0]
    D = z_mols.shape[1]            # feature_dim
    H1 = w1.shape[1]
    H2 = w2.shape[1]

    cdt = compute_dtype                               # matmul operand dtype
    edt = _elementwise_dtype_for_backend(cdt)         # LN/ReLU/select dtype

    # --- XLA glue: row gathers + label-column gather ---
    # TODO(synk): fusing the z_mols row gather into the kernel would need a
    # per-row DMA gather (memory_space=pl.ANY + scalar-prefetched indices);
    # left in XLA since its traffic is negligible vs. the weights.
    z_h = z_mols[h_inds, :].astype(cdt)               # (P, D)
    z_t = z_mols[t_inds, :].astype(cdt)               # (P, D)
    w3_sel = w3.T[labels, :].astype(edt)              # (P, H2): only needed columns

    fuse_fc1 = D < 256
    if fuse_fc1:
        z_inputs = [jnp.concatenate([z_h, z_t], axis=-1)]          # (P, 2D)
        w1_inputs = [w1.astype(cdt)]                               # (2D, H1)
    else:
        z_inputs = [z_h, z_t]
        w1_inputs = [w1[:D, :].astype(cdt), w1[D:, :].astype(cdt)]

    # --- M-tile selection: multiple of 128, capped at the request, and sized
    # so the grid has >=2 steps whenever P allows (both v7x TensorCores). ---
    tile_req = max(128, (int(tile_m) // 128) * 128)
    two_step_cap = ((P - 1) // 128) * 128             # largest 128-multiple < P
    tile_m = min(tile_req, two_step_cap) if two_step_cap >= 128 else 128
    P_pad = pl.cdiv(P, tile_m) * tile_m
    num_tiles = P_pad // tile_m

    if P_pad != P:
        pad = P_pad - P
        z_inputs = [jnp.pad(z, ((0, pad), (0, 0))) for z in z_inputs]
        w3_sel = jnp.pad(w3_sel, ((0, pad), (0, 0)))

    # Biases stay f32 (added to the f32 MXU accumulator); LN affine params in edt.
    b1c, b2c = b1.astype(jnp.float32), b2.astype(jnp.float32)
    g1c, be1c = g1.astype(edt), be1.astype(edt)
    g2c, be2c = g2.astype(edt), be2.astype(edt)
    w2c = w2.astype(cdt)

    row = lambda cols: pl.BlockSpec((tile_m, cols), lambda i: (i, 0))   # per-pair tiles
    rep = lambda shape: pl.BlockSpec(shape, lambda i: (0, 0))           # grid-invariant

    in_specs = ([row(z.shape[1]) for z in z_inputs]
                + [rep(w.shape) for w in w1_inputs]
                + [rep((1, H1)), rep((1, H1)), rep((1, H1)),   # b1, g1, be1
                   rep((H1, H2)),                              # w2
                   rep((1, H2)), rep((1, H2)), rep((1, H2)),   # b2, g2, be2
                   row(H2)])                                   # w3_sel

    operands = (*z_inputs, *w1_inputs, b1c, g1c, be1c, w2c, b2c, g2c, be2c, w3_sel)

    flops = 2 * P_pad * (2 * D * H1 + H1 * H2 + H2)
    bytes_accessed = (sum(int(a.size) * a.dtype.itemsize for a in operands)
                      + P_pad * 4)

    out = pl.pallas_call(
        _make_kernel(fuse_fc1),
        out_shape=jax.ShapeDtypeStruct((num_tiles, 1, tile_m), jnp.float32),
        grid_spec=pltpu.PrefetchScalarGridSpec(
            num_scalar_prefetch=0,
            grid=(num_tiles,),
            in_specs=in_specs,
            out_specs=pl.BlockSpec((1, 1, tile_m), lambda i: (i, 0, 0)),
        ),
        compiler_params=pltpu.CompilerParams(
            dimension_semantics=("parallel",),
            # v5e's scoped-VMEM default is only 16 MiB; raise it so tile_m>=256
            # keeps full double-buffering at real scale (fits v7x's 64 MiB too).
            vmem_limit_bytes=48 * 1024 * 1024,
        ),
        cost_estimate=pl.CostEstimate(
            flops=flops, transcendentals=2 * P_pad,
            bytes_accessed=bytes_accessed),
    )(*operands)

    # Label bias added in XLA (removes the 1-lane b3_sel stream from the kernel).
    return out.reshape(P_pad)[:P] + b3[0, labels]


def init_mlp_params(key, input_dim, hidden_dims, output_dim):
    """Deterministic init mimicking nn.Linear's U(-1/sqrt(fan_in), +1/sqrt(fan_in))."""
    def linear(k, fan_in, fan_out):
        kw, kb = jax.random.split(k)
        bound = 1.0 / jnp.sqrt(float(fan_in))
        w = jax.random.uniform(kw, (fan_in, fan_out), jnp.float32, -bound, bound)
        b = jax.random.uniform(kb, (1, fan_out), jnp.float32, -bound, bound)
        return w, b

    k1, k2, k3 = jax.random.split(key, 3)
    h1, h2 = hidden_dims
    w1, b1 = linear(k1, input_dim, h1)
    g1, be1 = jnp.ones((1, h1), jnp.float32), jnp.zeros((1, h1), jnp.float32)
    w2, b2 = linear(k2, h1, h2)
    g2, be2 = jnp.ones((1, h2), jnp.float32), jnp.zeros((1, h2), jnp.float32)
    w3, b3 = linear(k3, h2, output_dim)
    return (w1, b1, g1, be1, w2, b2, g2, be2, w3, b3)


def ref_forward(z_mols, h_inds, t_inds, labels, params):
    """Pure-JAX f32 reference mirroring the PyTorch forward."""
    (w1, b1, g1, be1, w2, b2, g2, be2, w3, b3) = params
    z = jnp.concatenate([z_mols[h_inds], z_mols[t_inds]], axis=-1)

    def ln(x, g, b):
        mu = x.mean(-1, keepdims=True)
        var = ((x - mu) ** 2).mean(-1, keepdims=True)
        return (x - mu) / jnp.sqrt(var + LN_EPS) * g + b

    h = jnp.maximum(ln(z @ w1 + b1, g1, be1), 0.0)
    h = jnp.maximum(ln(h @ w2 + b2, g2, be2), 0.0)
    o = h @ w3 + b3
    return o[jnp.arange(labels.shape[0]), labels]


if __name__ == "__main__":
    # Small shapes consistent with the module's forward pass (lane-aligned).
    NUM_MOLS = 16
    FEATURE_DIM = 64           # mol encoder output (real model: 128 -> D_in 256)
    MLP_HIDDEN = [128, 256]    # args.mlp_hidden_dims scaled down (real: [512, 1024])
    NUM_LABELS = 792           # fixed in the reference script
    P = 256                    # number of (head, tail) drug pairs

    key = jax.random.PRNGKey(0)
    k_z, k_h, k_t, k_l, k_p = jax.random.split(key, 5)

    # TODO(synk): z_mols stands in for GraphIsomorphismNetwork(mols)['graph_feature'].
    z_mols = jax.random.normal(k_z, (NUM_MOLS, FEATURE_DIM), jnp.float32)
    h_inds = jax.random.randint(k_h, (P,), 0, NUM_MOLS, jnp.int32)
    t_inds = jax.random.randint(k_t, (P,), 0, NUM_MOLS, jnp.int32)
    labels = jax.random.randint(k_l, (P,), 0, NUM_LABELS, jnp.int32)

    params = init_mlp_params(k_p, 2 * FEATURE_DIM, MLP_HIDDEN, NUM_LABELS)

    # 1) Production path: bf16 matmul operands (+ bf16 elementwise on v6e/v7x).
    #    tile_m request 256 is auto-capped to 128 here so P=256 still runs as
    #    two grid steps (keeps both v7x TensorCores busy).
    fwd_bf16 = jax.jit(functools.partial(simple_ddi_forward,
                                         tile_m=256,
                                         compute_dtype=jnp.bfloat16))
    out_bf16 = fwd_bf16(z_mols, h_inds, t_inds, labels, params)
    jax.block_until_ready(out_bf16)
    ref = ref_forward(z_mols, h_inds, t_inds, labels, params)
    assert out_bf16.shape == (P,)
    # Loose band for the reduced-precision path; exact structure is validated
    # by the f32 runs below.
    assert jnp.allclose(out_bf16, ref, atol=1e-1, rtol=5e-2)

    # 2) f32 exactness check with a non-multiple-of-tile batch (padded tail),
    #    exercising the fused-fc1 (D < 256) branch.
    P2 = 200
    fwd_f32 = jax.jit(functools.partial(simple_ddi_forward,
                                        tile_m=256,
                                        compute_dtype=jnp.float32))
    out_f32 = fwd_f32(z_mols, h_inds[:P2], t_inds[:P2], labels[:P2], params)
    jax.block_until_ready(out_f32)
    ref2 = ref_forward(z_mols, h_inds[:P2], t_inds[:P2], labels[:P2], params)
    assert out_f32.shape == (P2,)
    assert jnp.allclose(out_f32, ref2, atol=2e-4, rtol=2e-4)

    # 3) f32 exactness check of the split-w1 branch (feature_dim >= 256).
    FEATURE_DIM_BIG = 256
    kb_z, kb_p = jax.random.split(jax.random.PRNGKey(1))
    z_big = jax.random.normal(kb_z, (NUM_MOLS, FEATURE_DIM_BIG), jnp.float32)
    params_big = init_mlp_params(kb_p, 2 * FEATURE_DIM_BIG, MLP_HIDDEN, NUM_LABELS)
    P3 = 192
    fwd_big = jax.jit(functools.partial(simple_ddi_forward,
                                        tile_m=256,
                                        compute_dtype=jnp.float32))
    out_big = fwd_big(z_big, h_inds[:P3], t_inds[:P3], labels[:P3], params_big)
    jax.block_until_ready(out_big)
    ref3 = ref_forward(z_big, h_inds[:P3], t_inds[:P3], labels[:P3], params_big)
    assert out_big.shape == (P3,)
    assert jnp.allclose(out_big, ref3, atol=2e-4, rtol=2e-4)

    print("KERNEL_OK")
</pallas_src>

<mosaic_0001>
module attributes {stable_mosaic.version = 11 : i64} {
  func.func @kernel(%arg0: i32, %arg1: memref<128x128xbf16, #tpu.memory_space<vmem>>, %arg2: memref<128x128xbf16, #tpu.memory_space<vmem>>, %arg3: memref<1x128xf32, #tpu.memory_space<vmem>>, %arg4: memref<1x128xbf16, #tpu.memory_space<vmem>>, %arg5: memref<1x128xbf16, #tpu.memory_space<vmem>>, %arg6: memref<128x256xbf16, #tpu.memory_space<vmem>>, %arg7: memref<1x256xf32, #tpu.memory_space<vmem>>, %arg8: memref<1x256xbf16, #tpu.memory_space<vmem>>, %arg9: memref<1x256xbf16, #tpu.memory_space<vmem>>, %arg10: memref<128x256xbf16, #tpu.memory_space<vmem>>, %arg11: memref<1x1x128xf32, #tpu.memory_space<vmem>>) attributes {dimension_semantics = [#tpu.dimension_semantics<parallel>], iteration_bounds = array<i64: 2>, scalar_prefetch = 0 : i64, scratch_operands = 0 : i64, tpu.core_type = #tpu.core_type<tc>, window_params = [{transform_indices = @transform_0, window_bounds = array<i64: 128, 128>}, {pipeline_mode = #tpu.pipeline_mode<synchronous>, transform_indices = @transform_1, window_bounds = array<i64: 128, 128>}, {pipeline_mode = #tpu.pipeline_mode<synchronous>, transform_indices = @transform_2, window_bounds = array<i64: 1, 128>}, {pipeline_mode = #tpu.pipeline_mode<synchronous>, transform_indices = @transform_3, window_bounds = array<i64: 1, 128>}, {pipeline_mode = #tpu.pipeline_mode<synchronous>, transform_indices = @transform_4, window_bounds = array<i64: 1, 128>}, {pipeline_mode = #tpu.pipeline_mode<synchronous>, transform_indices = @transform_5, window_bounds = array<i64: 128, 256>}, {pipeline_mode = #tpu.pipeline_mode<synchronous>, transform_indices = @transform_6, window_bounds = array<i64: 1, 256>}, {pipeline_mode = #tpu.pipeline_mode<synchronous>, transform_indices = @transform_7, window_bounds = array<i64: 1, 256>}, {pipeline_mode = #tpu.pipeline_mode<synchronous>, transform_indices = @transform_8, window_bounds = array<i64: 1, 256>}, {transform_indices = @transform_9, window_bounds = array<i64: 128, 256>}, {transform_indices = @transform_10, window_bounds = array<i64: 1, 1, 128>}]} {
    %c0 = arith.constant 0 : index
    %c0_0 = arith.constant 0 : index
    %0 = vector.load %arg1[%c0, %c0_0] : memref<128x128xbf16, #tpu.memory_space<vmem>>, vector<128x128xbf16>
    %c0_1 = arith.constant 0 : index
    %c0_2 = arith.constant 0 : index
    %1 = vector.load %arg2[%c0_1, %c0_2] : memref<128x128xbf16, #tpu.memory_space<vmem>>, vector<128x128xbf16>
    %cst = arith.constant dense<0.000000e+00> : vector<128x128xf32>
    %2 = tpu.matmul %0, %1, %cst {dimension_numbers = #tpu.dot_dimension_numbers<[1], [0], [0], [1], [0, 0, 1, 1], [], []>} : vector<128x128xbf16>, vector<128x128xbf16>, vector<128x128xf32> -> vector<128x128xf32>
    %c0_3 = arith.constant 0 : index
    %c0_4 = arith.constant 0 : index
    %3 = vector.load %arg3[%c0_3, %c0_4] : memref<1x128xf32, #tpu.memory_space<vmem>>, vector<1x128xf32>
    %4 = vector.broadcast %3 : vector<1x128xf32> to vector<128x128xf32>
    %5 = arith.addf %2, %4 : vector<128x128xf32>
    %cst_5 = arith.constant dense<0.000000e+00> : vector<128xf32>
    %6 = vector.multi_reduction <add>, %5, %cst_5 [1] : vector<128x128xf32> to vector<128xf32>
    %7 = vector.shape_cast %6 : vector<128xf32> to vector<128x1xf32>
    %cst_6 = arith.constant 1.280000e+02 : f32
    %8 = vector.broadcast %cst_6 : f32 to vector<128x1xf32>
    %9 = arith.divf %7, %8 : vector<128x1xf32>
    %10 = arith.mulf %5, %5 : vector<128x128xf32>
    %cst_7 = arith.constant dense<0.000000e+00> : vector<128xf32>
    %11 = vector.multi_reduction <add>, %10, %cst_7 [1] : vector<128x128xf32> to vector<128xf32>
    %12 = vector.shape_cast %11 : vector<128xf32> to vector<128x1xf32>
    %cst_8 = arith.constant 1.280000e+02 : f32
    %13 = vector.broadcast %cst_8 : f32 to vector<128x1xf32>
    %14 = arith.divf %12, %13 : vector<128x1xf32>
    %15 = arith.mulf %9, %9 : vector<128x1xf32>
    %16 = arith.subf %14, %15 : vector<128x1xf32>
    %cst_9 = arith.constant 0.000000e+00 : f32
    %17 = vector.broadcast %cst_9 : f32 to vector<128x1xf32>
    %18 = arith.maximumf %16, %17 : vector<128x1xf32>
    %cst_10 = arith.constant 9.99999974E-6 : f32
    %19 = vector.broadcast %cst_10 : f32 to vector<128x1xf32>
    %20 = arith.addf %18, %19 : vector<128x1xf32>
    %21 = math.rsqrt %20 : vector<128x1xf32>
    %22 = arith.truncf %5 : vector<128x128xf32> to vector<128x128xbf16>
    %23 = arith.truncf %9 : vector<128x1xf32> to vector<128x1xbf16>
    %24 = vector.broadcast %23 : vector<128x1xbf16> to vector<128x128xbf16>
    %25 = arith.subf %22, %24 : vector<128x128xbf16>
    %26 = arith.truncf %21 : vector<128x1xf32> to vector<128x1xbf16>
    %27 = vector.broadcast %26 : vector<128x1xbf16> to vector<128x128xbf16>
    %28 = arith.mulf %25, %27 : vector<128x128xbf16>
    %c0_11 = arith.constant 0 : index
    %c0_12 = arith.constant 0 : index
    %29 = vector.load %arg4[%c0_11, %c0_12] : memref<1x128xbf16, #tpu.memory_space<vmem>>, vector<1x128xbf16>
    %30 = vector.broadcast %29 : vector<1x128xbf16> to vector<128x128xbf16>
    %31 = arith.mulf %28, %30 : vector<128x128xbf16>
    %c0_13 = arith.constant 0 : index
    %c0_14 = arith.constant 0 : index
    %32 = vector.load %arg5[%c0_13, %c0_14] : memref<1x128xbf16, #tpu.memory_space<vmem>>, vector<1x128xbf16>
    %33 = vector.broadcast %32 : vector<1x128xbf16> to vector<128x128xbf16>
    %34 = arith.addf %31, %33 : vector<128x128xbf16>
    %cst_15 = arith.constant 0.000000e+00 : bf16
    %35 = vector.broadcast %cst_15 : bf16 to vector<128x128xbf16>
    %36 = arith.maximumf %34, %35 : vector<128x128xbf16>
    %c0_16 = arith.constant 0 : index
    %c0_17 = arith.constant 0 : index
    %37 = vector.load %arg6[%c0_16, %c0_17] : memref<128x256xbf16, #tpu.memory_space<vmem>>, vector<128x256xbf16>
    %cst_18 = arith.constant dense<0.000000e+00> : vector<128x256xf32>
    %38 = tpu.matmul %36, %37, %cst_18 {dimension_numbers = #tpu.dot_dimension_numbers<[1], [0], [0], [1], [0, 0, 1, 1], [], []>} : vector<128x128xbf16>, vector<128x256xbf16>, vector<128x256xf32> -> vector<128x256xf32>
    %c0_19 = arith.constant 0 : index
    %c0_20 = arith.constant 0 : index
    %39 = vector.load %arg7[%c0_19, %c0_20] : memref<1x256xf32, #tpu.memory_space<vmem>>, vector<1x256xf32>
    %40 = vector.broadcast %39 : vector<1x256xf32> to vector<128x256xf32>
    %41 = arith.addf %38, %40 : vector<128x256xf32>
    %cst_21 = arith.constant dense<0.000000e+00> : vector<128xf32>
    %42 = vector.multi_reduction <add>, %41, %cst_21 [1] : vector<128x256xf32> to vector<128xf32>
    %43 = vector.shape_cast %42 : vector<128xf32> to vector<128x1xf32>
    %cst_22 = arith.constant 2.560000e+02 : f32
    %44 = vector.broadcast %cst_22 : f32 to vector<128x1xf32>
    %45 = arith.divf %43, %44 : vector<128x1xf32>
    %46 = arith.mulf %41, %41 : vector<128x256xf32>
    %cst_23 = arith.constant dense<0.000000e+00> : vector<128xf32>
    %47 = vector.multi_reduction <add>, %46, %cst_23 [1] : vector<128x256xf32> to vector<128xf32>
    %48 = vector.shape_cast %47 : vector<128xf32> to vector<128x1xf32>
    %cst_24 = arith.constant 2.560000e+02 : f32
    %49 = vector.broadcast %cst_24 : f32 to vector<128x1xf32>
    %50 = arith.divf %48, %49 : vector<128x1xf32>
    %51 = arith.mulf %45, %45 : vector<128x1xf32>
    %52 = arith.subf %50, %51 : vector<128x1xf32>
    %cst_25 = arith.constant 0.000000e+00 : f32
    %53 = vector.broadcast %cst_25 : f32 to vector<128x1xf32>
    %54 = arith.maximumf %52, %53 : vector<128x1xf32>
    %cst_26 = arith.constant 9.99999974E-6 : f32
    %55 = vector.broadcast %cst_26 : f32 to vector<128x1xf32>
    %56 = arith.addf %54, %55 : vector<128x1xf32>
    %57 = math.rsqrt %56 : vector<128x1xf32>
    %58 = arith.truncf %41 : vector<128x256xf32> to vector<128x256xbf16>
    %59 = arith.truncf %45 : vector<128x1xf32> to vector<128x1xbf16>
    %60 = vector.broadcast %59 : vector<128x1xbf16> to vector<128x256xbf16>
    %61 = arith.subf %58, %60 : vector<128x256xbf16>
    %62 = arith.truncf %57 : vector<128x1xf32> to vector<128x1xbf16>
    %63 = vector.broadcast %62 : vector<128x1xbf16> to vector<128x256xbf16>
    %64 = arith.mulf %61, %63 : vector<128x256xbf16>
    %c0_27 = arith.constant 0 : index
    %c0_28 = arith.constant 0 : index
    %65 = vector.load %arg8[%c0_27, %c0_28] : memref<1x256xbf16, #tpu.memory_space<vmem>>, vector<1x256xbf16>
    %66 = vector.broadcast %65 : vector<1x256xbf16> to vector<128x256xbf16>
    %67 = arith.mulf %64, %66 : vector<128x256xbf16>
    %c0_29 = arith.constant 0 : index
    %c0_30 = arith.constant 0 : index
    %68 = vector.load %arg9[%c0_29, %c0_30] : memref<1x256xbf16, #tpu.memory_space<vmem>>, vector<1x256xbf16>
    %69 = vector.broadcast %68 : vector<1x256xbf16> to vector<128x256xbf16>
    %70 = arith.addf %67, %69 : vector<128x256xbf16>
    %cst_31 = arith.constant 0.000000e+00 : bf16
    %71 = vector.broadcast %cst_31 : bf16 to vector<128x256xbf16>
    %72 = arith.maximumf %70, %71 : vector<128x256xbf16>
    %c0_32 = arith.constant 0 : index
    %c0_33 = arith.constant 0 : index
    %73 = vector.load %arg10[%c0_32, %c0_33] : memref<128x256xbf16, #tpu.memory_space<vmem>>, vector<128x256xbf16>
    %74 = arith.mulf %72, %73 : vector<128x256xbf16>
    %75 = arith.extf %74 : vector<128x256xbf16> to vector<128x256xf32>
    %cst_34 = arith.constant dense<0.000000e+00> : vector<128xf32>
    %76 = vector.multi_reduction <add>, %75, %cst_34 [1] : vector<128x256xf32> to vector<128xf32>
    %77 = vector.shape_cast %76 : vector<128xf32> to vector<1x1x128xf32>
    %c0_35 = arith.constant 0 : index
    %c0_36 = arith.constant 0 : index
    %c0_37 = arith.constant 0 : index
    %78 = vector.load %arg11[%c0_35, %c0_36, %c0_37] : memref<1x1x128xf32, #tpu.memory_space<vmem>>, vector<1x1x128xf32>
    tpu.vector_store %arg11[%c0_35, %c0_36, %c0_37], %77 {strides = array<i32>} : memref<1x1x128xf32, #tpu.memory_space<vmem>>, vector<1x1x128xf32>,
    return
  }
  func.func @transform_0(%arg0: i32) -> (i32, i32) {
    %c0_i32 = arith.constant 0 : i32
    %c0_i32_0 = arith.constant 0 : i32
    return %arg0, %c0_i32 : i32, i32
  }
  func.func @transform_1(%arg0: i32) -> (i32, i32) {
    %c0_i32 = arith.constant 0 : i32
    %c0_i32_0 = arith.constant 0 : i32
    %c0_i32_1 = arith.constant 0 : i32
    return %c0_i32, %c0_i32_0 : i32, i32
  }
  func.func @transform_2(%arg0: i32) -> (i32, i32) {
    %c0_i32 = arith.constant 0 : i32
    %c0_i32_0 = arith.constant 0 : i32
    %c0_i32_1 = arith.constant 0 : i32
    return %c0_i32, %c0_i32_0 : i32, i32
  }
  func.func @transform_3(%arg0: i32) -> (i32, i32) {
    %c0_i32 = arith.constant 0 : i32
    %c0_i32_0 = arith.constant 0 : i32
    %c0_i32_1 = arith.constant 0 : i32
    return %c0_i32, %c0_i32_0 : i32, i32
  }
  func.func @transform_4(%arg0: i32) -> (i32, i32) {
    %c0_i32 = arith.constant 0 : i32
    %c0_i32_0 = arith.constant 0 : i32
    %c0_i32_1 = arith.constant 0 : i32
    return %c0_i32, %c0_i32_0 : i32, i32
  }
  func.func @transform_5(%arg0: i32) -> (i32, i32) {
    %c0_i32 = arith.constant 0 : i32
    %c0_i32_0 = arith.constant 0 : i32
    %c0_i32_1 = arith.constant 0 : i32
    return %c0_i32, %c0_i32_0 : i32, i32
  }
  func.func @transform_6(%arg0: i32) -> (i32, i32) {
    %c0_i32 = arith.constant 0 : i32
    %c0_i32_0 = arith.constant 0 : i32
    %c0_i32_1 = arith.constant 0 : i32
    return %c0_i32, %c0_i32_0 : i32, i32
  }
  func.func @transform_7(%arg0: i32) -> (i32, i32) {
    %c0_i32 = arith.constant 0 : i32
    %c0_i32_0 = arith.constant 0 : i32
    %c0_i32_1 = arith.constant 0 : i32
    return %c0_i32, %c0_i32_0 : i32, i32
  }
  func.func @transform_8(%arg0: i32) -> (i32, i32) {
    %c0_i32 = arith.constant 0 : i32
    %c0_i32_0 = arith.constant 0 : i32
    %c0_i32_1 = arith.constant 0 : i32
    return %c0_i32, %c0_i32_0 : i32, i32
  }
  func.func @transform_9(%arg0: i32) -> (i32, i32) {
    %c0_i32 = arith.constant 0 : i32
    %c0_i32_0 = arith.constant 0 : i32
    return %arg0, %c0_i32 : i32, i32
  }
  func.func @transform_10(%arg0: i32) -> (i32, i32, i32) {
    %c0_i32 = arith.constant 0 : i32
    %c0_i32_0 = arith.constant 0 : i32
    %c0_i32_1 = arith.constant 0 : i32
    return %arg0, %c0_i32, %c0_i32_0 : i32, i32, i32
  }
}

</mosaic_0001>

<bundles_post_ra>
// kernel: simple_ddi_forward.1
= control target key start
LH: loop header
LB: loop body
LE: loop exit
PB: predicated region body
PF: predicated region fallthrough
CT: control target
= control target key end

     0   :  { %s2250_s13 = smov 0   ;;  %s3090_s0 = inlined_call_operand.vmem [shape: bf16[256,128], index: 0, kind: input, shape index: {}]   ;;  %s3091_s1 = inlined_call_operand.vmem [shape: bf16[128,128], index: 1, kind: input, shape index: {}]   ;;  %s3092_s2 = inlined_call_operand.vmem [shape: f32[1,128], index: 2, kind: input, shape index: {}]   ;;  %s3093_s3 = inlined_call_operand.vmem [shape: bf16[1,128], index: 3, kind: input, shape index: {}]   ;;  %s3094_s4 = inlined_call_operand.vmem [shape: bf16[1,128], index: 4, kind: input, shape index: {}]   ;;  %s3095_s5 = inlined_call_operand.vmem [shape: bf16[128,256], index: 5, kind: input, shape index: {}]   ;;  %s3096_s6 = inlined_call_operand.vmem [shape: f32[1,256], index: 6, kind: input, shape index: {}]   ;;  %s3097_s7 = inlined_call_operand.vmem [shape: bf16[1,256], index: 7, kind: input, shape index: {}]   ;;  %s3098_s8 = inlined_call_operand.vmem [shape: bf16[1,256], index: 8, kind: input, shape index: {}]   ;;  %s3099_s9 = inlined_call_operand.vmem [shape: bf16[256,256], index: 9, kind: input, shape index: {}]   ;;  %s3100_s10 = inlined_call_operand.vmem [shape: f32[2,1,128], index: 10, kind: output, shape index: {}]  }
   0x1 LB: > { %s2256_s14 = sadd.s32 4294967295, %s2191_s13   ;;  %p1923_p0 = scmp.ge.s32.totalorder %s2191_s13, 1  ;;  %s2191_s13 = sphi %s2250_s13, %s20_s13  }
   0x2   : > { %p325_p1 = scmp.lt.s32.totalorder %s2191_s13, 3 }
   0x4   : > { %p326_p2 = pnand %p1923_p0, %p325_p1 }
   0x5   : > { %v2057_v0 = vld [vmem:[%s3091_s1] sm:$0xff] (!%p326_p2)   ;;  %s1924_s17 = sshll.u32 (!%p326_p2), %s2256_s14, 4  ;;  %v2058_v1 = vld [vmem:[%s3091_s1 + $0x8] sm:$0xff] (!%p326_p2)   ;;  %v2059_v2 = vld [vmem:[%s3091_s1 + $0x10] sm:$0xff] (!%p326_p2)   ;;  %vm1758_vm0 = vcmask (!%p326_p2), 130112   ;;  %vm1765_vm1 = vcmask (!%p326_p2), 195712  }
   0x6   : > { %329 = sbr.rel (%p326_p2) target bundleno = 1069 (0x42d), region = 60  ;;  %p368_p3 = scmp.lt.s32.totalorder (!%p326_p2), %s1924_s17, 31  ;;  %1999 = vmatprep.subr.bf16.mxu0 (!%p326_p2), %v2057_v0  ;;  %v2060_v3 = vld [vmem:[%s3091_s1 + $0x18] sm:$0xff] (!%p326_p2)   ;;  %v2061_v5 = vld [vmem:[%s3091_s1 + $0x20] sm:$0xff] (!%p326_p2)   ;;  %v2062_v6 = vld [vmem:[%s3091_s1 + $0x28] sm:$0xff] (!%p326_p2)   ;;  %vm1772_vm2 = vcmask (!%p326_p2), 261312  }
   0x7   : > { %2000 = vmatpush3.bf16.msra.mxu0 (!%p326_p2), %v2057_v0  ;;  %v2063_v7 = vld [vmem:[%s3091_s1 + $0x30] sm:$0xff] (!%p326_p2)   ;;  %v2064_v8 = vld [vmem:[%s3091_s1 + $0x38] sm:$0xff] (!%p326_p2)   ;;  %v1929_v16 = vld [vmem:[%s3092_s2] ss:$0 sm:$0xff] (!%p326_p2)  ;;  %vm1779_vm3 = vcmask (!%p326_p2), 326912   ;;  %vm1786_vm4 = vcmask (!%p326_p2), 392512  }
   0x8   : > { %2001 = vmatprep.subr.bf16.mxu0 (!%p326_p2), %v2058_v1  ;;  %v2075_v0 = vld [vmem:[%s3095_s5 + $0x4] ss:$8 sps:$4 sm:$0xff] (!%p326_p2)   ;;  %vm1793_vm5 = vcmask (!%p326_p2), 458112   ;;  %vm1800_vm6 = vcmask (!%p326_p2), 523712   ;;  %vm1807_vm7 = vcmask (!%p326_p2), 589312   ;;  %vm1814_vm8 = vcmask (!%p326_p2), 654912  }
   0x9   : > { %2031 = vmatprep.subr.bf16.mxu1 (!%p326_p2), %v2075_v0  ;;  %vm1821_vm9 = vcmask (!%p326_p2), 720512   ;;  %p380_p4 = scmp.lt.s32.totalorder (!%p326_p2), %s2256_s14, 1  ;;  %vm1828_vm10 = vcmask (!%p326_p2), 786112   ;;  %vm1835_vm11 = vcmask (!%p326_p2), 851712   ;;  %vm1842_vm12 = vcmask (!%p326_p2), 917312  }
   0xa   : > { %vm1849_vm13 = vcmask (!%p326_p2), 982912   ;;  %vm1856_vm14 = vcmask (!%p326_p2), 1048512  }
   0xb   : > { %2002 = vmatpush3.bf16.msra.mxu0 (!%p326_p2), %v2058_v1  ;;  %v2073_v1 = vld [vmem:[%s3095_s5] ss:$8 sps:$4 sm:$0xff] (!%p326_p2)  }
   0xc   : > { %2003 = vmatprep.subr.bf16.mxu0 (!%p326_p2), %v2059_v2  ;;  %2039 = vmatpush1.bf16.msra.mxu1 (!%p326_p2), %v2073_v1 }
   0xd   : > { %s3121_s17 = smov (!%p368_p3, %s1924_s17), 31  ;;  %s3123_s14 = smov (!%p380_p4, %s2256_s14), 1 }
   0xe   : > { %s1925_s22 = sshll.u32 %s3121_s17, 2  ;;  %s1982_s12 = sshll.u32 %s3121_s17, 3 }
   0xf   : > { %s2273_s25 = scalar_lea.vmem %s3090_s0, %s1925_s22  ;;  %2004 = vmatpush3.bf16.msra.mxu0 %v2059_v2  ;;  %s2291_s20 = scalar_lea.vmem %s3099_s9, %s1982_s12 }
  0x10   : > { %v2065_v4 = vld [vmem:[%s2273_s25] sm:$0xff]   ;;  %2005 = vmatprep.subr.bf16.mxu0 %v2060_v3  ;;  %v2066_v9 = vld [vmem:[%s2273_s25 + $0x8] sm:$0xff]   ;;  %v2067_v10 = vld [vmem:[%s2273_s25 + $0x10] sm:$0xff]   ;;  %s382_s15 = scalar_lea.vmem %s3100_s10, %s3123_s14 }
  0x11   : > { %2015 = vmatprep.mubr.bf16.mxu0 %v2065_v4  ;;  %v2068_v11 = vld [vmem:[%s2273_s25 + $0x18] sm:$0xff]   ;;  %v2069_v12 = vld [vmem:[%s2273_s25 + $0x20] sm:$0xff]   ;;  %v2070_v13 = vld [vmem:[%s2273_s25 + $0x28] sm:$0xff]  }
  0x12   : > { %v2071_v14 = vld [vmem:[%s2273_s25 + $0x30] sm:$0xff]   ;;  %v2072_v15 = vld [vmem:[%s2273_s25 + $0x38] sm:$0xff]  }
  0x13   : > { %2006 = vmatpush3.bf16.msra.mxu0 %v2060_v3  ;;  %v2078_v4 = vld [vmem:[%s3095_s5 + $0x14] ss:$8 sps:$4 sm:$0xff]  }
  0x14   : > { %2007 = vmatprep.subr.bf16.mxu0 %v2061_v5  ;;  %2032 = vmatprep.subr.bf16.mxu1 %v2078_v4 }
  0x17   : > { %2008 = vmatpush3.bf16.msra.mxu0 %v2061_v5  ;;  %v2076_v5 = vld [vmem:[%s3095_s5 + $0x10] ss:$8 sps:$4 sm:$0xff]  }
  0x18   : > { %2009 = vmatprep.subr.bf16.mxu0 %v2062_v6  ;;  %2040 = vmatpush1.bf16.msra.mxu1 %v2076_v5 }
  0x1b   : > { %2010 = vmatpush3.bf16.msra.mxu0 %v2062_v6 }
  0x1c   : > { %2011 = vmatprep.subr.bf16.mxu0 %v2063_v7 }
  0x1f   : > { %2012 = vmatpush3.bf16.msra.mxu0 %v2063_v7  ;;  %v2081_v7 = vld [vmem:[%s3095_s5 + $0x24] ss:$8 sps:$4 sm:$0xff]  }
  0x20   : > { %2013 = vmatprep.subr.bf16.mxu0 %v2064_v8  ;;  %2033 = vmatprep.subr.bf16.mxu1 %v2081_v7 }
  0x23   : > { %2014 = vmatpush3.bf16.msra.mxu0 %v2064_v8  ;;  %v2079_v8 = vld [vmem:[%s3095_s5 + $0x20] ss:$8 sps:$4 sm:$0xff]  }
  0x24   : > { %997 = vmatprep.subr.bf16.mxu0 %v2075_v0  ;;  %2041 = vmatpush1.bf16.msra.mxu1 %v2079_v8 }
  0x26   : > { %2016 = vmatmul.mubr.bf16.vlgmr.msra.gmra.mrb[0].mxu0 %v2066_v9 }
  0x27   : > { %2019 = vmatprep.mubr.bf16.mxu0 %v2067_v10  ;;  %998 = vmatpush1.bf16.msra.mxu0 %v2073_v1  ;;  %v2084_v10 = vld [vmem:[%s3095_s5 + $0x34] ss:$8 sps:$4 sm:$0xff]  }
  0x28   : > { %999 = vmatprep.subr.bf16.mxu0 %v2078_v4  ;;  %2034 = vmatprep.subr.bf16.mxu1 %v2084_v10 }
  0x2b   : > { %1000 = vmatpush1.bf16.msra.mxu0 %v2076_v5 }
  0x2c   : > { %1001 = vmatprep.subr.bf16.mxu0 %v2081_v7 }
  0x2e   : > { %2020 = vmatmul.mubr.bf16.gmra.mrb[4].mxu0 %v2068_v11  ;;  %v2082_v11 = vld [vmem:[%s3095_s5 + $0x30] ss:$8 sps:$4 sm:$0xff]  }
  0x2f   : > { %2023 = vmatprep.mubr.bf16.mxu0 %v2069_v12  ;;  %1002 = vmatpush1.bf16.msra.mxu0 %v2079_v8 }
  0x30   : > { %1003 = vmatprep.subr.bf16.mxu0 %v2084_v10  ;;  %2042 = vmatpush1.bf16.msra.mxu1 %v2082_v11 }
  0x33   : > { %1004 = vmatpush1.bf16.msra.mxu0 %v2082_v11 }
  0x36   : > { %2024 = vmatmul.mubr.bf16.gmra.mrb[8].mxu0 %v2070_v13  ;;  %v2087_v13 = vld [vmem:[%s3095_s5 + $0x44] ss:$8 sps:$4 sm:$0xff]  }
  0x37   : > { %2027 = vmatprep.mubr.bf16.mxu0 %v2071_v14  ;;  %v2085_v14 = vld [vmem:[%s3095_s5 + $0x40] ss:$8 sps:$4 sm:$0xff]   ;;  %1005 = vmatprep.subr.bf16.mxu0 %v2087_v13 }
  0x38   : > { %1006 = vmatpush1.bf16.msra.mxu0 %v2085_v14  ;;  %2035 = vmatprep.subr.bf16.mxu1 %v2087_v13 }
  0x39   : > { %2043 = vmatpush1.bf16.msra.mxu1 %v2085_v14 }
  0x3e   : > { %2028 = vmatmul.mubr.bf16.gmra.mrb[12].mxu0 %v2072_v15 }
  0xf9   : > { %v2017_v17 = vpop.f32.mrb[0].mxu0 }
  0xfa   : > { %v553_v18 = vpop.f32.mrb[1].mxu0  ;;  %v2308_v21 = vadd.f32 %v2017_v17, %v1929_v16  ;;  %v2090_v17 = vld [vmem:[%s3095_s5 + $0x54] ss:$8 sps:$4 sm:$0xff]  }
  0xfb   : > { %v2306_v19 = vadd.f32 %v1929_v16, %v553_v18  ;;  %v2018_v20 = vpop.f32.mrb[2].mxu0  ;;  %v2088_v18 = vld [vmem:[%s3095_s5 + $0x50] ss:$8 sps:$4 sm:$0xff]   ;;  %1007 = vmatprep.subr.bf16.mxu0 %v2090_v17  ;;  %2036 = vmatprep.subr.bf16.mxu1 %v2090_v17 }
  0xfc   : > { %v2310_v22 = vadd.f32 %v2018_v20, %v1929_v16  ;;  %v556_v23 = vpop.f32.mrb[3].mxu0  ;;  %v667_v9 = vmul.f32 %v2308_v21, %v2308_v21  ;;  %1008 = vmatpush1.bf16.msra.mxu0 %v2088_v18  ;;  %2044 = vmatpush1.bf16.msra.mxu1 %v2088_v18  ;;  %v2093_v20 = vld [vmem:[%s3095_s5 + $0x64] ss:$8 sps:$4 sm:$0xff]  }
  0xfd   : > { %v2312_v24 = vadd.f32 %v1929_v16, %v556_v23  ;;  %616 = vadd.xlane.f32.xlu0 %v2306_v19  ;;  %v665_v52 = vmul.f32 %v2306_v19, %v2306_v19  ;;  %v2091_v23 = vld [vmem:[%s3095_s5 + $0x60] ss:$8 sps:$4 sm:$0xff]   ;;  %1009 = vmatprep.subr.bf16.mxu0 %v2093_v20 }
  0xfe   : > { %v810_v25 = vpack.c.bf16 %v2310_v22, %v2308_v21  ;;  %v668_v12 = vmul.f32 %v2310_v22, %v2310_v22  ;;  %2037 = vmatprep.subr.bf16.mxu1 %v2093_v20 }
  0xff   : > { %v809_v26 = vpack.c.bf16 %v2312_v24, %v2306_v19  ;;  %618 = vadd.xlane.f32.xlu1 %v2312_v24  ;;  %v666_v37 = vmul.f32 %v2312_v24, %v2312_v24 }
 0x100   : > { %1010 = vmatpush1.bf16.msra.mxu0 %v2091_v23  ;;  %2045 = vmatpush1.bf16.msra.mxu1 %v2091_v23 }
 0x101   : > { %v2021_v27 = vpop.f32.mrb[4].mxu0 }
 0x102   : > { %v2320_v28 = vadd.f32 %v2021_v27, %v1929_v16  ;;  %v569_v29 = vpop.f32.mrb[5].mxu0 }
 0x103   : > { %v2022_v30 = vpop.f32.mrb[6].mxu0  ;;  %v2325_v33 = vadd.f32 %v1929_v16, %v569_v29 }
 0x104   : > { %v2322_v31 = vadd.f32 %v2022_v30, %v1929_v16  ;;  %v572_v32 = vpop.f32.mrb[7].mxu0  ;;  %628 = vadd.xlane.f32.xlu0 %v2320_v28  ;;  %v671_v39 = vmul.f32 %v2320_v28, %v2320_v28  ;;  %v2096_v30 = vld [vmem:[%s3095_s5 + $0x74] ss:$8 sps:$4 sm:$0xff]  }
 0x105   : > { %v2327_v34 = vadd.f32 %v1929_v16, %v572_v32  ;;  %v669_v44 = vmul.f32 %v2325_v33, %v2325_v33  ;;  %v2094_v32 = vld [vmem:[%s3095_s5 + $0x70] ss:$8 sps:$4 sm:$0xff]   ;;  %1011 = vmatprep.subr.bf16.mxu0 %v2096_v30  ;;  %2038 = vmatprep.subr.bf16.mxu1 %v2096_v30 }
 0x106   : > { %v812_v35 = vpack.c.bf16 %v2322_v31, %v2320_v28  ;;  %630 = vadd.xlane.f32.xlu1 %v2322_v31  ;;  %v672_v50 = vmul.f32 %v2322_v31, %v2322_v31  ;;  %1012 = vmatpush1.bf16.msra.mxu0 %v2094_v32 }
 0x107   : > { %v811_v36 = vpack.c.bf16 %v2327_v34, %v2325_v33  ;;  %v670_v55 = vmul.f32 %v2327_v34, %v2327_v34  ;;  %2046 = vmatpush1.bf16.msra.mxu1 %v2094_v32 }
 0x108   : > { %624 = vadd.xlane.f32.xlu0 %v2325_v33 }
 0x109   : > { %v2025_v38 = vpop.f32.mrb[8].mxu0 }
 0x10a   : > { %683 = vadd.xlane.f32.xlu1 %v666_v37  ;;  %v2339_v40 = vadd.f32 %v2025_v38, %v1929_v16  ;;  %v585_v41 = vpop.f32.mrb[9].mxu0  ;;  %v3102_v37 = vmov 0  }
 0x10b   : > { %v2341_v42 = vadd.f32 %v1929_v16, %v585_v41  ;;  %v2026_v43 = vpop.f32.mrb[10].mxu0  ;;  %1029 = vmatprep.mubr.bf16.mxu0 %v3102_v37  ;;  %1049 = vmatprep.mubr.bf16.mxu1 %v3102_v37 }
 0x10c   : > { %693 = vadd.xlane.f32.xlu0 %v671_v39  ;;  %v2345_v45 = vadd.f32 %v2026_v43, %v1929_v16  ;;  %v588_v46 = vpop.f32.mrb[11].mxu0  ;;  %v675_v63 = vmul.f32 %v2339_v40, %v2339_v40 }
 0x10d   : > { %v2347_v47 = vadd.f32 %v1929_v16, %v588_v46  ;;  %v673_v3 = vmul.f32 %v2341_v42, %v2341_v42 }
 0x10e   : > { %689 = vadd.xlane.f32.xlu1 %v669_v44  ;;  %v814_v48 = vpack.c.bf16 %v2345_v45, %v2339_v40  ;;  %v676_v2 = vmul.f32 %v2345_v45, %v2345_v45 }
 0x10f   : > { %v813_v49 = vpack.c.bf16 %v2347_v47, %v2341_v42  ;;  %v674_v6 = vmul.f32 %v2347_v47, %v2347_v47 }
 0x110   : > { %626 = vadd.xlane.f32.xlu0 %v2327_v34 }
 0x111   : > { %v2029_v51 = vpop.f32.mrb[12].mxu0 }
 0x112   : > { %695 = vadd.xlane.f32.xlu1 %v672_v50  ;;  %v601_v53 = vpop.f32.mrb[13].mxu0  ;;  %v2360_v56 = vadd.f32 %v2029_v51, %v1929_v16 }
 0x113   : > { %v2030_v54 = vpop.f32.mrb[14].mxu0  ;;  %v2364_v59 = vadd.f32 %v1929_v16, %v601_v53 }
 0x114   : > { %681 = vadd.xlane.f32.xlu0 %v665_v52  ;;  %v2362_v57 = vadd.f32 %v2030_v54, %v1929_v16  ;;  %v604_v58 = vpop.f32.mrb[15].mxu0  ;;  %v679_v27 = vmul.f32 %v2360_v56, %v2360_v56 }
 0x115   : > { %v2366_v60 = vadd.f32 %v1929_v16, %v604_v58  ;;  %v677_v15 = vmul.f32 %v2364_v59, %v2364_v59 }
 0x116   : > { %691 = vadd.xlane.f32.xlu1 %v670_v55  ;;  %v816_v61 = vpack.c.bf16 %v2362_v57, %v2360_v56  ;;  %v680_v29 = vmul.f32 %v2362_v57, %v2362_v57 }
 0x117   : > { %v815_v62 = vpack.c.bf16 %v2366_v60, %v2364_v59  ;;  %v678_v16 = vmul.f32 %v2366_v60, %v2366_v60 }
 0x118   : > { %636 = vadd.xlane.f32.xlu0 %v2339_v40 }
 0x11a   : > { %638 = vadd.xlane.f32.xlu1 %v2345_v45 }
 0x11c   : > { %632 = vadd.xlane.f32.xlu0 %v2341_v42 }
 0x11e   : > { %634 = vadd.xlane.f32.xlu1 %v2347_v47 }
 0x120   : > { %701 = vadd.xlane.f32.xlu0 %v675_v63 }
 0x122   : > { %703 = vadd.xlane.f32.xlu1 %v676_v2 }
 0x124   : > { %697 = vadd.xlane.f32.xlu0 %v673_v3 }
 0x126   : > { %699 = vadd.xlane.f32.xlu1 %v674_v6 }
 0x128   : > { %620 = vadd.xlane.f32.xlu0 %v2308_v21 }
 0x12a   : > { %622 = vadd.xlane.f32.xlu1 %v2310_v22 }
 0x12c   : > { %685 = vadd.xlane.f32.xlu0 %v667_v9 }
 0x12e   : > { %687 = vadd.xlane.f32.xlu1 %v668_v12 }
 0x130   : > { %640 = vadd.xlane.f32.xlu0 %v2364_v59 }
 0x132   : > { %642 = vadd.xlane.f32.xlu1 %v2366_v60 }
 0x134   : > { %705 = vadd.xlane.f32.xlu0 %v677_v15 }
 0x136   : > { %707 = vadd.xlane.f32.xlu1 %v678_v16 }
 0x138   : > { %644 = vadd.xlane.f32.xlu0 %v2360_v56 }
 0x13a   : > { %646 = vadd.xlane.f32.xlu1 %v2362_v57 }
 0x13c   : > { %709 = vadd.xlane.f32.xlu0 %v679_v27 }
 0x13e   : > { %711 = vadd.xlane.f32.xlu1 %v680_v29 }
 0x18a   : > { %v617_v38 = vpop.xlane.xlu0 %616 }
 0x18b   : > { %v2466_v7 = vmul.f32 0.0078125, %v617_v38 }
 0x18c   : > { %v619_v39 = vpop.xlane.xlu1 %618 }
 0x18d   : > { %v2452_v44 = vmul.f32 0.0078125, %v619_v39  ;;  %v729_v16 = vmul.f32 %v2466_v7, %v2466_v7 }
 0x18f   : > { %v730_v53 = vmul.f32 %v2452_v44, %v2452_v44 }
 0x191   : > { %v629_v41 = vpop.xlane.xlu0 %628 }
 0x192   : > { %v2454_v50 = vmul.f32 0.0078125, %v629_v41 }
 0x193   : > { %v631_v43 = vpop.xlane.xlu1 %630 }
 0x194   : > { %v735_v58 = vmul.f32 %v2454_v50, %v2454_v50  ;;  %v2462_v4 = vmul.f32 0.0078125, %v631_v43 }
 0x195   : > { %v625_v46 = vpop.xlane.xlu0 %624 }
 0x196   : > { %v2458_v54 = vmul.f32 0.0078125, %v625_v46  ;;  %v736_v13 = vmul.f32 %v2462_v4, %v2462_v4 }
 0x197   : > { %v684_v51 = vpop.xlane.xlu1 %683 }
 0x198   : > { %v714_v52 = vmul.f32 0.0078125, %v684_v51  ;;  %v733_v5 = vmul.f32 %v2458_v54, %v2458_v54 }
 0x199   : > { %v694_v55 = vpop.xlane.xlu0 %693 }
 0x19a   : > { %v719_v63 = vmul.f32 0.0078125, %v694_v55  ;;  %v746_v0 = vsub.f32 %v714_v52, %v730_v53  ;;  %v3101_v55 = vlaneseq }
 0x19b   : > { %v690_v1 = vpop.xlane.xlu1 %689 }
 0x19c   : > { %v751_v2 = vsub.f32 %v719_v63, %v735_v58  ;;  %v717_v3 = vmul.f32 0.0078125, %v690_v1  ;;  %v762_v8 = vmax.f32 %v746_v0, 0.0 }
 0x19d   : > { %v627_v6 = vpop.xlane.xlu0 %626 }
 0x19e   : > { %v749_v9 = vsub.f32 %v717_v3, %v733_v5  ;;  %v767_v11 = vmax.f32 %v751_v2, 0.0  ;;  %v2468_v12 = vmul.f32 0.0078125, %v627_v6  ;;  %v778_v18 = vadd.f32 1e-05, %v762_v8  ;;  %v849_v8 = vld [vmem:[%s3093_s3] sm:$0x1] }
 0x19f   : > { %v696_v10 = vpop.xlane.xlu1 %695  ;;  %v2479_v5 = vshrl.u32 %v3101_v55, 7 }
 0x1a0   : > { %v720_v14 = vmul.f32 0.0078125, %v696_v10  ;;  %v765_v20 = vmax.f32 %v749_v9, 0.0  ;;  %v783_v29 = vadd.f32 1e-05, %v767_v11  ;;  %v734_v30 = vmul.f32 %v2468_v12, %v2468_v12 }
 0x1a1   : > { %v682_v15 = vpop.xlane.xlu0 %681  ;;  %2121 = vrsqrt.f32 %v778_v18  ;;  %v913_v56 = vsub.s32 1, %v2479_v5 }
 0x1a2   : > { %v713_v17 = vmul.f32 0.0078125, %v682_v15  ;;  %v752_v23 = vsub.f32 %v720_v14, %v736_v13  ;;  %v781_v51 = vadd.f32 1e-05, %v765_v20  ;;  %2123 = vrsqrt.f32 %v783_v29 }
 0x1a3   : > { %v692_v27 = vpop.xlane.xlu1 %691  ;;  %v851_v15 = vpack.i.b16 %v849_v8, %v849_v8  ;;  %v817_v29 = vpack.c.bf16 %v2452_v44, %v2466_v7 }
 0x1a4   : > { %v745_v32 = vsub.f32 %v713_v17, %v729_v16  ;;  %v718_v38 = vmul.f32 0.0078125, %v692_v27  ;;  %v768_v39 = vmax.f32 %v752_v23, 0.0  ;;  %v2491_v16 = vsub.s32 0, %v2479_v5 }
 0x1a5   : > { %v637_v41 = vpop.xlane.xlu0 %636 }
 0x1a6   : > { %v761_v43 = vmax.f32 %v745_v32, 0.0  ;;  %v750_v46 = vsub.f32 %v718_v38, %v734_v30  ;;  %v784_v52 = vadd.f32 1e-05, %v768_v39  ;;  %v2476_v2 = vmul.f32 0.0078125, %v637_v41 }
 0x1a7   : > { %v639_v53 = vpop.xlane.xlu1 %638  ;;  %v2509_v7 = vrot.slane %v851_v15, %v2491_v16 }
 0x1a8   : > { %v777_v58 = vadd.f32 1e-05, %v761_v43  ;;  %v766_v63 = vmax.f32 %v750_v46, 0.0  ;;  %2125 = vrsqrt.f32 %v784_v52  ;;  %v2481_v6 = vmul.f32 0.0078125, %v639_v53  ;;  %v865_v46 = vld [vmem:[%s3094_s4] sm:$0x1] }
 0x1a9   : > { %v633_v0 = vpop.xlane.xlu0 %632  ;;  %v739_v10 = vmul.f32 %v2476_v2, %v2476_v2  ;;  %v820_v52 = vpack.c.bf16 %v2462_v4, %v2454_v50  ;;  %v819_v53 = vpack.c.bf16 %v2468_v12, %v2458_v54  ;;  %v867_v54 = vpack.i.b16 %v865_v46, %v865_v46 }
 0x1aa   : > { %2127 = vrsqrt.f32 %v777_v58  ;;  %v782_v1 = vadd.f32 1e-05, %v766_v63  ;;  %v2488_v11 = vmul.f32 0.0078125, %v633_v0  ;;  %v740_v17 = vmul.f32 %v2481_v6, %v2481_v6 }
 0x1ab   : > { %2129 = vrsqrt.f32 %v781_v51  ;;  %v635_v3 = vpop.xlane.xlu1 %634  ;;  %v2122_v27 = vpop.eup %2121  ;;  %v828_v19 = vsub.bf16 %v812_v35, %v820_v52  ;;  %v2528_v33 = vrot.slane %v867_v54, %v2491_v16 }
 0x1ac   : > { %2131 = vrsqrt.f32 %v782_v1  ;;  %v2495_v18 = vmul.f32 0.0078125, %v635_v3  ;;  %v2124_v32 = vpop.eup %2123  ;;  %v737_v38 = vmul.f32 %v2488_v11, %v2488_v11 }
 0x1ad   : > { %v702_v9 = vpop.xlane.xlu0 %701 }
 0x1ae   : > { %v723_v13 = vmul.f32 0.0078125, %v702_v9  ;;  %v738_v63 = vmul.f32 %v2495_v18, %v2495_v18  ;;  %v825_v9 = vsub.bf16 %v809_v26, %v817_v29 }
 0x1af   : > { %v704_v14 = vpop.xlane.xlu1 %703 }
 0x1b0   : > { %v755_v20 = vsub.f32 %v723_v13, %v739_v10  ;;  %v724_v23 = vmul.f32 0.0078125, %v704_v14 }
 0x1b1   : > { %v698_v30 = vpop.xlane.xlu0 %697 }
 0x1b2   : > { %v771_v39 = vmax.f32 %v755_v20, 0.0  ;;  %v756_v41 = vsub.f32 %v724_v23, %v740_v17  ;;  %v721_v43 = vmul.f32 0.0078125, %v698_v30  ;;  %v2126_v51 = vpop.eup %2125  ;;  %v827_v20 = vsub.bf16 %v811_v36, %v819_v53 }
 0x1b3   : > { %v700_v44 = vpop.xlane.xlu1 %699  ;;  %v836_v17 = vpack.c.bf16 %v2126_v51, %v2124_v32 }
 0x1b4   : > { %v2128_v58 = vpop.eup %2127  ;;  %v772_v0 = vmax.f32 %v756_v41, 0.0  ;;  %v753_v1 = vsub.f32 %v721_v43, %v737_v38  ;;  %v722_v3 = vmul.f32 0.0078125, %v700_v44  ;;  %v787_v4 = vadd.f32 1e-05, %v771_v39 }
 0x1b5   : > { %v2130_v8 = vpop.eup %2129  ;;  %v833_v50 = vpack.c.bf16 %v2122_v27, %v2128_v58  ;;  %v621_v10 = vpop.xlane.xlu0 %620  ;;  %v844_v43 = vmul.bf16 %v836_v17, %v828_v19 }
 0x1b6   : > { %v2132_v12 = vpop.eup %2131  ;;  %v788_v13 = vadd.f32 1e-05, %v772_v0  ;;  %v769_v14 = vmax.f32 %v753_v1, 0.0  ;;  %v754_v15 = vsub.f32 %v722_v3, %v738_v63  ;;  %v2519_v30 = vmul.f32 0.0078125, %v621_v10 }
 0x1b7   : > { %v841_v23 = vmul.bf16 %v833_v50, %v825_v9  ;;  %v623_v38 = vpop.xlane.xlu1 %622  ;;  %v835_v41 = vpack.c.bf16 %v2132_v12, %v2130_v8  ;;  %2133 = vrsqrt.f32 %v787_v4  ;;  %v860_v50 = vmul.bf16 %v2509_v7, %v844_v43 }
 0x1b8   : > { %v785_v24 = vadd.f32 1e-05, %v769_v14  ;;  %v770_v26 = vmax.f32 %v754_v15, 0.0  ;;  %v2524_v27 = vmul.f32 0.0078125, %v623_v38  ;;  %2135 = vrsqrt.f32 %v788_v13 }
 0x1b9   : > { %v686_v29 = vpop.xlane.xlu0 %685  ;;  %v857_v32 = vmul.bf16 %v2509_v7, %v841_v23  ;;  %v843_v34 = vmul.bf16 %v835_v41, %v827_v20  ;;  %v731_v39 = vmul.f32 %v2519_v30, %v2519_v30  ;;  %v821_v14 = vpack.c.bf16 %v2495_v18, %v2488_v11 }
 0x1ba   : > { %v786_v36 = vadd.f32 1e-05, %v770_v26  ;;  %2137 = vrsqrt.f32 %v785_v24  ;;  %v715_v28 = vmul.f32 0.0078125, %v686_v29  ;;  %v732_v51 = vmul.f32 %v2524_v27, %v2524_v27 }
 0x1bb   : > { %v688_v31 = vpop.xlane.xlu1 %687  ;;  %v873_v35 = vadd.bf16 %v2528_v33, %v857_v32  ;;  %v859_v46 = vmul.bf16 %v2509_v7, %v843_v34  ;;  %v876_v41 = vadd.bf16 %v2528_v33, %v860_v50  ;;  %v822_v11 = vpack.c.bf16 %v2481_v6, %v2476_v2 }
 0x1bc   : > { %2139 = vrsqrt.f32 %v786_v36  ;;  %v716_v52 = vmul.f32 0.0078125, %v688_v31  ;;  %v747_v53 = vsub.f32 %v715_v28, %v731_v39  ;;  %v829_v34 = vsub.bf16 %v813_v49, %v821_v14 }
 0x1bd   : > { %v881_v44 = vmax.bf16 %v3102_v37, %v873_v35  ;;  %v641_v58 = vpop.xlane.xlu0 %640  ;;  %v875_v63 = vadd.bf16 %v2528_v33, %v859_v46  ;;  %v884_v31 = vmax.bf16 %v3102_v37, %v876_v41  ;;  %v830_v2 = vsub.bf16 %v814_v48, %v822_v11 }
 0x1be   : > { %v748_v0 = vsub.f32 %v716_v52, %v732_v51  ;;  %v2538_v1 = vmul.f32 0.0078125, %v641_v58  ;;  %v763_v3 = vmax.f32 %v747_v53, 0.0  ;;  %v818_v47 = vpack.c.bf16 %v2524_v27, %v2519_v30 }
 0x1bf   : > { %v643_v8 = vpop.xlane.xlu1 %642  ;;  %1030 = vmatmul.mubr.bf16.vlgmr.msra.gmra.mrb[16].mxu0 %v881_v44  ;;  %v883_v9 = vmax.bf16 %v3102_v37, %v875_v63 }
 0x1c0   : > { %v764_v4 = vmax.f32 %v748_v0, 0.0  ;;  %v2542_v10 = vmul.f32 0.0078125, %v643_v8  ;;  %v741_v54 = vmul.f32 %v2538_v1, %v2538_v1  ;;  %1039 = vmatprep.mubr.bf16.mxu0 %v3102_v37  ;;  %v779_v12 = vadd.f32 1e-05, %v763_v3 }
 0x1c1   : > { %1050 = vmatmul.mubr.bf16.vlgmr.msra.gmra.mrb[0].mxu1 %v883_v9  ;;  %v706_v13 = vpop.xlane.xlu0 %705  ;;  %v2134_v23 = vpop.eup %2133  ;;  %v826_v30 = vsub.bf16 %v810_v25, %v818_v47 }
 0x1c2   : > { %v780_v15 = vadd.f32 1e-05, %v764_v4  ;;  %v742_v17 = vmul.f32 %v2542_v10, %v2542_v10  ;;  %v725_v20 = vmul.f32 0.0078125, %v706_v13  ;;  %1059 = vmatprep.mubr.bf16.mxu1 %v3102_v37  ;;  %2141 = vrsqrt.f32 %v779_v12  ;;  %v2136_v19 = vpop.eup %2135 }
 0x1c3   : > { %v708_v38 = vpop.xlane.xlu1 %707  ;;  %v838_v46 = vpack.c.bf16 %v2136_v19, %v2134_v23  ;;  %v823_v23 = vpack.c.bf16 %v2542_v10, %v2538_v1 }
 0x1c4   : > { %2143 = vrsqrt.f32 %v780_v15  ;;  %v726_v24 = vmul.f32 0.0078125, %v708_v38  ;;  %v757_v26 = vsub.f32 %v725_v20, %v741_v54  ;;  %v2138_v29 = vpop.eup %2137 }
 0x1c5   : > { %v645_v18 = vpop.xlane.xlu0 %644  ;;  %v846_v8 = vmul.bf16 %v838_v46, %v830_v2  ;;  %v831_v19 = vsub.bf16 %v815_v62, %v823_v23 }
 0x1c6   : > { %v2140_v32 = vpop.eup %2139  ;;  %v758_v36 = vsub.f32 %v726_v24, %v742_v17  ;;  %v773_v39 = vmax.f32 %v757_v26, 0.0  ;;  %v663_v28 = vmul.f32 0.0078125, %v645_v18 }
 0x1c7   : > { %v647_v43 = vpop.xlane.xlu1 %646  ;;  %v837_v35 = vpack.c.bf16 %v2140_v32, %v2138_v29  ;;  %v862_v13 = vmul.bf16 %v2509_v7, %v846_v8 }
 0x1c8   : > { %v774_v51 = vmax.f32 %v758_v36, 0.0  ;;  %v789_v52 = vadd.f32 1e-05, %v773_v39  ;;  %v664_v53 = vmul.f32 0.0078125, %v647_v43  ;;  %v743_v6 = vmul.f32 %v663_v28, %v663_v28 }
 0x1c9   : > { %1060 = vmatmul.mubr.bf16.gmra.mrb[4].mxu1 %v884_v31  ;;  %v710_v44 = vpop.xlane.xlu0 %709  ;;  %v845_v42 = vmul.bf16 %v837_v35, %v829_v34  ;;  %v878_v22 = vadd.bf16 %v2528_v33, %v862_v13  ;;  %v905_v31 = vld [vmem:[%s3096_s6] sm:$0x3] }
 0x1ca   : > { %v790_v49 = vadd.f32 1e-05, %v774_v51  ;;  %2145 = vrsqrt.f32 %v789_v52  ;;  %v744_v58 = vmul.f32 %v664_v53, %v664_v53  ;;  %1069 = vmatprep.mubr.bf16.mxu1 %v3102_v37  ;;  %v727_v0 = vmul.f32 0.0078125, %v710_v44 }
 0x1cb   : > { %v712_v63 = vpop.xlane.xlu1 %711  ;;  %v861_v3 = vmul.bf16 %v2509_v7, %v845_v42  ;;  %v886_v26 = vmax.bf16 %v3102_v37, %v878_v22  ;;  %v824_v10 = vpack.c.bf16 %v664_v53, %v663_v28  ;;  %v2599_v57 = vrot.slane %v905_v31, %v2491_v16 }
 0x1cc   : > { %2147 = vrsqrt.f32 %v790_v49  ;;  %v728_v40 = vmul.f32 0.0078125, %v712_v63  ;;  %v2142_v45 = vpop.eup %2141  ;;  %v759_v48 = vsub.f32 %v727_v0, %v743_v6 }
 0x1cd   : > { %v877_v9 = vadd.bf16 %v2528_v33, %v861_v3  ;;  %v832_v59 = vsub.bf16 %v816_v61, %v824_v10  ;;  %v2601_v61 = vrot.slane %v905_v31, %v913_v56 }
 0x1ce   : > { %v2144_v50 = vpop.eup %2143  ;;  %v760_v27 = vsub.f32 %v728_v40, %v744_v58  ;;  %v775_v4 = vmax.f32 %v759_v48, 0.0 }
 0x1cf   : > { %v885_v54 = vmax.bf16 %v3102_v37, %v877_v9  ;;  %v834_v12 = vpack.c.bf16 %v2144_v50, %v2142_v45 }
 0x1d0   : > { %v776_v14 = vmax.f32 %v760_v27, 0.0  ;;  %v791_v15 = vadd.f32 1e-05, %v775_v4 }
 0x1d1   : > { %1070 = vmatmul.mubr.bf16.gmra.mrb[8].mxu1 %v885_v54  ;;  %v842_v17 = vmul.bf16 %v834_v12, %v826_v30 }
 0x1d2   : > { %v792_v20 = vadd.f32 1e-05, %v776_v14  ;;  %1079 = vmatprep.mubr.bf16.mxu1 %v3102_v37  ;;  %2149 = vrsqrt.f32 %v791_v15 }
 0x1d3   : > { %v858_v21 = vmul.bf16 %v2509_v7, %v842_v17 }
 0x1d4   : > { %v2146_v25 = vpop.eup %2145  ;;  %2151 = vrsqrt.f32 %v792_v20 }
 0x1d5   : > { %v874_v38 = vadd.bf16 %v2528_v33, %v858_v21 }
 0x1d6   : > { %v2148_v41 = vpop.eup %2147 }
 0x1d7   : > { %v882_v24 = vmax.bf16 %v3102_v37, %v874_v38  ;;  %v839_v29 = vpack.c.bf16 %v2148_v41, %v2146_v25 }
 0x1d9   : > { %1040 = vmatmul.mubr.bf16.gmra.mrb[20].mxu0 %v882_v24  ;;  %1080 = vmatmul.mubr.bf16.gmra.mrb[12].mxu1 %v886_v26  ;;  %v847_v1 = vmul.bf16 %v839_v29, %v831_v19 }
 0x1da   : > { %1089 = vmatprep.mubr.bf16.mxu1 %v3102_v37 }
 0x1db   : > { %v863_v11 = vmul.bf16 %v2509_v7, %v847_v1 }
 0x1dc   : > { %v2150_v18 = vpop.eup %2149 }
 0x1dd   : > { %v879_v32 = vadd.bf16 %v2528_v33, %v863_v11 }
 0x1de   : > { %v2152_v34 = vpop.eup %2151 }
 0x1df   : > { %v887_v60 = vmax.bf16 %v3102_v37, %v879_v32  ;;  %v840_v62 = vpack.c.bf16 %v2152_v34, %v2150_v18 }
 0x1e1   : > { %1090 = vmatmul.mubr.bf16.gmra.mrb[16].mxu1 %v887_v60  ;;  %v848_v36 = vmul.bf16 %v840_v62, %v832_v59 }
 0x1e2   : > { %1099 = vmatprep.mubr.bf16.mxu1 %v3102_v37 }
 0x1e3   : > { %v864_v39 = vmul.bf16 %v2509_v7, %v848_v36 }
 0x1e5   : > { %v880_v43 = vadd.bf16 %v2528_v33, %v864_v39 }
 0x1e7   : > { %v888_v28 = vmax.bf16 %v3102_v37, %v880_v43 }
 0x1e9   : > { %1100 = vmatmul.mubr.bf16.gmra.mrb[20].mxu1 %v888_v28 }
 0x292   : > { %v1031_v35 = vpop.f32.mrb[16].mxu0 }
 0x293   : > { %v2604_v46 = vadd.f32 %v1031_v35, %v2599_v57  ;;  %v1033_v7 = vpop.f32.mrb[17].mxu0 }
 0x294   : > { %v2607_v33 = vadd.f32 %v1033_v7, %v2601_v61  ;;  %v1035_v51 = vpop.f32.mrb[18].mxu0  ;;  %v1051_v52 = vpop.f32.mrb[0].mxu1 }
 0x295   : > { %v2610_v53 = vadd.f32 %v1035_v51, %v2599_v57  ;;  %v2613_v2 = vadd.f32 %v1051_v52, %v2599_v57  ;;  %v1037_v6 = vpop.f32.mrb[19].mxu0  ;;  %v1053_v44 = vpop.f32.mrb[1].mxu1  ;;  %v1175_v42 = vmul.f32 %v2604_v46, %v2604_v46 }
 0x296   : > { %v2618_v47 = vadd.f32 %v1037_v6, %v2601_v61  ;;  %v2621_v49 = vadd.f32 %v1053_v44, %v2601_v61  ;;  %v1055_v58 = vpop.f32.mrb[2].mxu1  ;;  %v1110_v63 = vadd.f32 %v2607_v33, %v2604_v46  ;;  %v1176_v0 = vmul.f32 %v2607_v33, %v2607_v33 }
 0x297   : > { %v1351_v3 = vpack.c.bf16 %v2610_v53, %v2604_v46  ;;  %v2630_v8 = vadd.f32 %v1055_v58, %v2599_v57  ;;  %v1057_v40 = vpop.f32.mrb[3].mxu1  ;;  %v1177_v45 = vmul.f32 %v2610_v53, %v2610_v53  ;;  %v1183_v48 = vmul.f32 %v2613_v2, %v2613_v2 }
 0x298   : > { %v1352_v9 = vpack.c.bf16 %v2618_v47, %v2607_v33  ;;  %v2639_v50 = vadd.f32 %v1057_v40, %v2601_v61  ;;  %1111 = vadd.xlane.f32.xlu0 %v1110_v63  ;;  %v1113_v30 = vadd.f32 %v2618_v47, %v2610_v53  ;;  %v1207_v27 = vadd.f32 %v1176_v0, %v1175_v42 }
 0x299   : > { %v1178_v54 = vmul.f32 %v2618_v47, %v2618_v47  ;;  %v2649_v12 = vadd.f32 %v2621_v49, %v2613_v2  ;;  %v1184_v13 = vmul.f32 %v2621_v49, %v2621_v49  ;;  %v1185_v17 = vmul.f32 %v2630_v8, %v2630_v8 }
 0x29a   : > { %1114 = vadd.xlane.f32.xlu1 %v1113_v30  ;;  %v2657_v15 = vadd.f32 %v2639_v50, %v2630_v8  ;;  %v1186_v20 = vmul.f32 %v2639_v50, %v2639_v50 }
 0x29b   : > { %v1210_v23 = vadd.f32 %v1178_v54, %v1177_v45  ;;  %v2663_v21 = vadd.f32 %v1184_v13, %v1183_v48 }
 0x29c   : > { %v1061_v22 = vpop.f32.mrb[4].mxu1  ;;  %1208 = vadd.xlane.f32.xlu0 %v1207_v27  ;;  %v2665_v25 = vadd.f32 %v1186_v20, %v1185_v17 }
 0x29d   : > { %v2668_v38 = vadd.f32 %v1061_v22, %v2599_v57  ;;  %v1063_v41 = vpop.f32.mrb[5].mxu1 }
 0x29e   : > { %v2671_v19 = vadd.f32 %v1063_v41, %v2601_v61  ;;  %v1065_v24 = vpop.f32.mrb[6].mxu1  ;;  %1211 = vadd.xlane.f32.xlu1 %v1210_v23 }
 0x29f   : > { %v2674_v26 = vadd.f32 %v1065_v24, %v2599_v57  ;;  %v1067_v29 = vpop.f32.mrb[7].mxu1  ;;  %v1187_v1 = vmul.f32 %v2668_v38, %v2668_v38 }
 0x2a0   : > { %v2679_v10 = vadd.f32 %v1067_v29, %v2601_v61  ;;  %v2683_v11 = vadd.f32 %v2671_v19, %v2668_v38  ;;  %v1188_v18 = vmul.f32 %v2671_v19, %v2671_v19 }
 0x2a1   : > { %v1189_v34 = vmul.f32 %v2674_v26, %v2674_v26 }
 0x2a2   : > { %v2695_v60 = vadd.f32 %v2679_v10, %v2674_v26  ;;  %v2697_v62 = vadd.f32 %v1188_v18, %v1187_v1  ;;  %v1190_v36 = vmul.f32 %v2679_v10, %v2679_v10 }
 0x2a4   : > { %v1071_v39 = vpop.f32.mrb[8].mxu1  ;;  %v2701_v43 = vadd.f32 %v1190_v36, %v1189_v34 }
 0x2a5   : > { %v2704_v28 = vadd.f32 %v1071_v39, %v2599_v57  ;;  %v1073_v31 = vpop.f32.mrb[9].mxu1 }
 0x2a6   : > { %v2707_v56 = vadd.f32 %v1073_v31, %v2601_v61  ;;  %v1075_v35 = vpop.f32.mrb[10].mxu1 }
 0x2a7   : > { %v2710_v7 = vadd.f32 %v1075_v35, %v2599_v57  ;;  %v1077_v51 = vpop.f32.mrb[11].mxu1  ;;  %v1191_v52 = vmul.f32 %v2704_v28, %v2704_v28 }
 0x2a8   : > { %v2715_v6 = vadd.f32 %v1077_v51, %v2601_v61  ;;  %v2719_v44 = vadd.f32 %v2707_v56, %v2704_v28  ;;  %v1192_v42 = vmul.f32 %v2707_v56, %v2707_v56 }
 0x2a9   : > { %v1193_v63 = vmul.f32 %v2710_v7, %v2710_v7 }
 0x2aa   : > { %v2731_v40 = vadd.f32 %v2715_v6, %v2710_v7  ;;  %v2733_v45 = vadd.f32 %v1192_v42, %v1191_v52  ;;  %v1194_v48 = vmul.f32 %v2715_v6, %v2715_v6 }
 0x2ac   : > { %v1041_v30 = vpop.f32.mrb[20].mxu0  ;;  %v1081_v27 = vpop.f32.mrb[12].mxu1  ;;  %v2737_v54 = vadd.f32 %v1194_v48, %v1193_v63 }
 0x2ad   : > { %v2740_v13 = vadd.f32 %v1041_v30, %v2599_v57  ;;  %v2743_v17 = vadd.f32 %v1081_v27, %v2599_v57  ;;  %v1043_v20 = vpop.f32.mrb[21].mxu0  ;;  %v1083_v23 = vpop.f32.mrb[13].mxu1 }
 0x2ae   : > { %v2746_v22 = vadd.f32 %v1043_v20, %v2601_v61  ;;  %v2749_v41 = vadd.f32 %v1083_v23, %v2601_v61  ;;  %v1045_v24 = vpop.f32.mrb[22].mxu0  ;;  %v1085_v29 = vpop.f32.mrb[14].mxu1 }
 0x2af   : > { %v2752_v1 = vadd.f32 %v1045_v24, %v2599_v57  ;;  %v2755_v18 = vadd.f32 %v1085_v29, %v2599_v57  ;;  %v1047_v34 = vpop.f32.mrb[23].mxu0  ;;  %v1087_v36 = vpop.f32.mrb[15].mxu1  ;;  %v1179_v39 = vmul.f32 %v2740_v13, %v2740_v13  ;;  %v1195_v31 = vmul.f32 %v2743_v17, %v2743_v17 }
 0x2b0   : > { %v2762_v35 = vadd.f32 %v1047_v34, %v2601_v61  ;;  %v2765_v51 = vadd.f32 %v1087_v36, %v2601_v61  ;;  %v1116_v52 = vadd.f32 %v2746_v22, %v2740_v13  ;;  %v1180_v42 = vmul.f32 %v2746_v22, %v2746_v22 }
 0x2b1   : > { %v1181_v30 = vmul.f32 %v2752_v1, %v2752_v1  ;;  %v2779_v27 = vadd.f32 %v2749_v41, %v2743_v17  ;;  %v1196_v55 = vmul.f32 %v2749_v41, %v2749_v41  ;;  %v1197_v48 = vmul.f32 %v2755_v18, %v2755_v18 }
 0x2b2   : > { %1117 = vadd.xlane.f32.xlu0 %v1116_v52  ;;  %v1119_v24 = vadd.f32 %v2762_v35, %v2752_v1  ;;  %v1213_v29 = vadd.f32 %v1180_v42, %v1179_v39  ;;  %v1182_v34 = vmul.f32 %v2762_v35, %v2762_v35  ;;  %v1143_v36 = vadd.f32 %v2765_v51, %v2755_v18 }
 0x2b3   : > { %v1198_v52 = vmul.f32 %v2765_v51, %v2765_v51  ;;  %v1237_v58 = vadd.f32 %v1196_v55, %v1195_v31 }
 0x2b4   : > { %1120 = vadd.xlane.f32.xlu1 %v1119_v24  ;;  %v1091_v0 = vpop.f32.mrb[16].mxu1  ;;  %v1216_v42 = vadd.f32 %v1182_v34, %v1181_v30 }
 0x2b5   : > { %v2798_v23 = vadd.f32 %v1091_v0, %v2599_v57  ;;  %v1093_v39 = vpop.f32.mrb[17].mxu1  ;;  %v1240_v14 = vadd.f32 %v1198_v52, %v1197_v48 }
 0x2b6   : > { %v2801_v59 = vadd.f32 %v1093_v39, %v2601_v61  ;;  %1123 = vadd.xlane.f32.xlu0 %v2649_v12  ;;  %v1095_v32 = vpop.f32.mrb[18].mxu1 }
 0x2b7   : > { %v2805_v4 = vadd.f32 %v1095_v32, %v2599_v57  ;;  %v1097_v24 = vpop.f32.mrb[19].mxu1  ;;  %v1199_v20 = vmul.f32 %v2798_v23, %v2798_v23 }
 0x2b8   : > { %v2810_v0 = vadd.f32 %v1097_v24, %v2601_v61  ;;  %1126 = vadd.xlane.f32.xlu1 %v2657_v15  ;;  %v1146_v55 = vadd.f32 %v2801_v59, %v2798_v23  ;;  %v1200_v12 = vmul.f32 %v2801_v59, %v2801_v59 }
 0x2b9   : > { %v1201_v32 = vmul.f32 %v2805_v4, %v2805_v4 }
 0x2ba   : > { %1214 = vadd.xlane.f32.xlu0 %v1213_v29  ;;  %v1149_v30 = vadd.f32 %v2810_v0, %v2805_v4  ;;  %v1243_v15 = vadd.f32 %v1200_v12, %v1199_v20  ;;  %v1202_v34 = vmul.f32 %v2810_v0, %v2810_v0 }
 0x2bc   : > { %1217 = vadd.xlane.f32.xlu1 %v1216_v42  ;;  %v1101_v52 = vpop.f32.mrb[20].mxu1  ;;  %v1246_v39 = vadd.f32 %v1202_v34, %v1201_v32 }
 0x2bd   : > { %v2828_v24 = vadd.f32 %v1101_v52, %v2599_v57  ;;  %v1103_v31 = vpop.f32.mrb[21].mxu1 }
 0x2be   : > { %v2831_v63 = vadd.f32 %v1103_v31, %v2601_v61  ;;  %1220 = vadd.xlane.f32.xlu0 %v2663_v21  ;;  %v1105_v29 = vpop.f32.mrb[22].mxu1 }
 0x2bf   : > { %v2835_v48 = vadd.f32 %v1105_v29, %v2599_v57  ;;  %v1107_v20 = vpop.f32.mrb[23].mxu1  ;;  %v1203_v12 = vmul.f32 %v2828_v24, %v2828_v24 }
 0x2c0   : > { %v2840_v42 = vadd.f32 %v1107_v20, %v2601_v61  ;;  %1223 = vadd.xlane.f32.xlu1 %v2665_v25  ;;  %v1152_v32 = vadd.f32 %v2831_v63, %v2828_v24  ;;  %v1204_v31 = vmul.f32 %v2831_v63, %v2831_v63  ;;  %v1962_v20 = vld.sshfl [vmem:[%s3097_s7] sm:$0x11 pattern:$0x75316420] }
 0x2c1   : > { %v1205_v57 = vmul.f32 %v2835_v48, %v2835_v48 }
 0x2c2   : > { %1129 = vadd.xlane.f32.xlu0 %v2683_v11  ;;  %v1155_v61 = vadd.f32 %v2840_v42, %v2835_v48  ;;  %v1249_v25 = vadd.f32 %v1204_v31, %v1203_v12  ;;  %v1206_v52 = vmul.f32 %v2840_v42, %v2840_v42 }
 0x2c4   : > { %1132 = vadd.xlane.f32.xlu1 %v2695_v60  ;;  %v1252_v29 = vadd.f32 %v1206_v52, %v1205_v57 }
 0x2c6   : > { %1226 = vadd.xlane.f32.xlu0 %v2697_v62 }
 0x2c8   : > { %1229 = vadd.xlane.f32.xlu1 %v2701_v43 }
 0x2ca   : > { %1135 = vadd.xlane.f32.xlu0 %v2719_v44 }
 0x2cc   : > { %1138 = vadd.xlane.f32.xlu1 %v2731_v40 }
 0x2ce   : > { %1232 = vadd.xlane.f32.xlu0 %v2733_v45 }
 0x2d0   : > { %1235 = vadd.xlane.f32.xlu1 %v2737_v54  ;;  %v2194_v54 = vmov 1966171168  }
 0x2d2   : > { %1141 = vadd.xlane.f32.xlu0 %v2779_v27  ;;  %v1426_v27 = vunpack.c.l.s4 %v2194_v54 }
 0x2d4   : > { %1144 = vadd.xlane.f32.xlu1 %v1143_v36 }
 0x2d6   : > { %1238 = vadd.xlane.f32.xlu0 %v1237_v58 }
 0x2d8   : > { %1241 = vadd.xlane.f32.xlu1 %v1240_v14 }
 0x2da   : > { %1147 = vadd.xlane.f32.xlu0 %v1146_v55 }
 0x2dc   : > { %1150 = vadd.xlane.f32.xlu1 %v1149_v30 }
 0x2de   : > { %1244 = vadd.xlane.f32.xlu0 %v1243_v15 }
 0x2e0   : > { %1247 = vadd.xlane.f32.xlu1 %v1246_v39  ;;  %v1427_v39 = vunpack.c.0.s8 %v1426_v27 }
 0x2e2   : > { %1153 = vadd.xlane.f32.xlu0 %v1152_v32  ;;  %v1430_v57 = vsub.s32 %v1427_v39, %v2479_v5 }
 0x2e4   : > { %1156 = vadd.xlane.f32.xlu1 %v1155_v61  ;;  %v1963_v61 = vld.sshfl [vmem:[%s3098_s8] sm:$0x11 pattern:$0x75316420] }
 0x2e5   : > { %v1478_v52 = vcombine.high %v1963_v61, %v1963_v61 }
 0x2e6   : > { %1250 = vadd.xlane.f32.xlu0 %v1249_v25  ;;  %v1424_v25 = vcombine.high %v1962_v20, %v1962_v20 }
 0x2e8   : > { %1253 = vadd.xlane.f32.xlu1 %v1252_v29  ;;  %v1431_v29 = vrot.slane %v1962_v20, %v1430_v57 }
 0x325   : > { %v1112_v11 = vpop.xlane.xlu0 %1111 }
 0x326   : > { %v1159_v60 = vmul.f32 0.00390625, %v1112_v11  ;;  %v1438_v11 = vrot.slane %v1424_v25, %v1430_v57  ;;  %v2097_v25 = vld [vmem:[%s2291_s20] ss:$8 sps:$4 sm:$0xff]  }
 0x327   : > { %v1115_v62 = vpop.xlane.xlu1 %1114 }
 0x328   : > { %v1160_v43 = vmul.f32 0.00390625, %v1115_v62  ;;  %v1271_v40 = vmul.f32 %v1159_v60, %v1159_v60  ;;  %v1485_v62 = vrot.slane %v1963_v61, %v1430_v57  ;;  %v1447_v54 = vpack.i.b16 %v1438_v11, %v1438_v11 }
 0x329   : > { %v1209_v44 = vpop.xlane.xlu0 %1208 }
 0x32a   : > { %v1255_v45 = vmul.f32 0.00390625, %v1209_v44  ;;  %v1272_v58 = vmul.f32 %v1160_v43, %v1160_v43  ;;  %v1492_v44 = vrot.slane %v1478_v52, %v1430_v57  ;;  %v2099_v52 = vld [vmem:[%s2291_s20 + $0x4] ss:$8 sps:$4 sm:$0xff]  }
 0x32b   : > { %v1212_v36 = vpop.xlane.xlu1 %1211 }
 0x32c   : > { %v1287_v14 = vsub.f32 %v1255_v45, %v1271_v40  ;;  %v1256_v55 = vmul.f32 0.00390625, %v1212_v36  ;;  %v1440_v40 = vpack.i.b16 %v1431_v29, %v1431_v29  ;;  %v1367_v45 = vpack.c.bf16 %v1160_v43, %v1159_v60 }
 0x32d   : > { %v1494_v36 = vpack.i.b16 %v1485_v62, %v1485_v62  ;;  %v2883_v43 = vrot.slane %v1447_v54, %v2491_v16 }
 0x32e   : > { %v1303_v30 = vmax.f32 %v1287_v14, 0.0  ;;  %v1288_v15 = vsub.f32 %v1256_v55, %v1272_v58  ;;  %v1501_v58 = vpack.i.b16 %v1492_v44, %v1492_v44  ;;  %v2874_v55 = vrot.slane %v1440_v40, %v2491_v16 }
 0x330   : > { %v1319_v12 = vadd.f32 1e-05, %v1303_v30  ;;  %v1304_v32 = vmax.f32 %v1288_v15, 0.0  ;;  %v1375_v30 = vsub.bf16 %v1351_v3, %v1367_v45  ;;  %v1376_v15 = vsub.bf16 %v1352_v9, %v1367_v45 }
 0x331   : > { %v2889_v46 = vrot.slane %v1501_v58, %v2491_v16 }
 0x332   : > { %v1320_v31 = vadd.f32 1e-05, %v1304_v32  ;;  %2153 = vrsqrt.f32 %v1319_v12 }
 0x334   : > { %2155 = vrsqrt.f32 %v1320_v31  ;;  %v2886_v31 = vrot.slane %v1494_v36, %v2491_v16 }
 0x33c   : > { %v2154_v27 = vpop.eup %2153 }
 0x33e   : > { %v2156_v14 = vpop.eup %2155 }
 0x33f   : > { %v1391_v39 = vpack.c.bf16 %v2156_v14, %v2154_v27  ;;  %v1118_v60 = vpop.xlane.xlu0 %1117 }
 0x340   : > { %v2893_v3 = vmul.f32 0.00390625, %v1118_v60 }
 0x341   : > { %v1121_v20 = vpop.xlane.xlu1 %1120  ;;  %v1399_v12 = vmul.bf16 %v1391_v39, %v1375_v30  ;;  %v1400_v32 = vmul.bf16 %v1391_v39, %v1376_v15 }
 0x342   : > { %v1162_v29 = vmul.f32 0.00390625, %v1121_v20  ;;  %v1273_v44 = vmul.f32 %v2893_v3, %v2893_v3 }
 0x343   : > { %v1124_v53 = vpop.xlane.xlu0 %1123  ;;  %v1453_v33 = vmul.bf16 %v2874_v55, %v1399_v12  ;;  %v1454_v47 = vmul.bf16 %v2883_v43, %v1400_v32 }
 0x344   : > { %v1163_v40 = vmul.f32 0.00390625, %v1124_v53  ;;  %v1274_v14 = vmul.f32 %v1162_v29, %v1162_v29 }
 0x345   : > { %v1127_v9 = vpop.xlane.xlu1 %1126  ;;  %v1507_v57 = vadd.bf16 %v2886_v31, %v1453_v33  ;;  %v1508_v61 = vadd.bf16 %v2889_v46, %v1454_v47 }
 0x346   : > { %v1164_v54 = vmul.f32 0.00390625, %v1127_v9  ;;  %v1275_v33 = vmul.f32 %v1163_v40, %v1163_v40 }
 0x347   : > { %v1215_v11 = vpop.xlane.xlu0 %1214  ;;  %v1523_v62 = vmax.bf16 %v3102_v37, %v1507_v57  ;;  %v1524_v16 = vmax.bf16 %v3102_v37, %v1508_v61 }
 0x348   : > { %v1257_v45 = vmul.f32 0.00390625, %v1215_v11  ;;  %v1276_v34 = vmul.f32 %v1164_v54, %v1164_v54 }
 0x349   : > { %v1218_v27 = vpop.xlane.xlu1 %1217  ;;  %v1635_v36 = vmul.bf16 %v2097_v25, %v1523_v62  ;;  %v1636_v58 = vmul.bf16 %v2099_v52, %v1524_v16 }
 0x34a   : > { %v1289_v30 = vsub.f32 %v1257_v45, %v1273_v44  ;;  %v1258_v15 = vmul.f32 0.00390625, %v1218_v27 }
 0x34b   : > { %v1221_v39 = vpop.xlane.xlu0 %1220  ;;  %v1653_v60 = vunpack.c.h.bf16 %v1635_v36  ;;  %v1654_v20 = vunpack.c.h.bf16 %v1636_v58  ;;  %v1651_v12 = vunpack.c.l.bf16 %v1635_v36  ;;  %v1652_v32 = vunpack.c.l.bf16 %v1636_v58 }
 0x34c   : > { %v1305_v47 = vmax.f32 %v1289_v30, 0.0  ;;  %v1290_v57 = vsub.f32 %v1258_v15, %v1274_v14  ;;  %v1259_v61 = vmul.f32 0.00390625, %v1221_v39 }
 0x34d   : > { %v1224_v21 = vpop.xlane.xlu1 %1223  ;;  %v1686_v53 = vadd.f32 %v1654_v20, %v1653_v60  ;;  %v1683_v11 = vadd.f32 %v1652_v32, %v1651_v12 }
 0x34e   : > { %v1321_v9 = vadd.f32 1e-05, %v1305_v47  ;;  %v1306_v37 = vmax.f32 %v1290_v57, 0.0  ;;  %v1291_v25 = vsub.f32 %v1259_v61, %v1275_v33  ;;  %v1260_v52 = vmul.f32 0.00390625, %v1224_v21 }
 0x34f   : > { %1687 = vadd.xlane.f32.xlu1 %v1686_v53  ;;  %1684 = vadd.xlane.f32.xlu0 %v1683_v11  ;;  %v1130_v62 = vpop.xlane.xlu0 %1129  ;;  %v1368_v57 = vpack.c.bf16 %v1162_v29, %v2893_v3  ;;  %v3105_v3 = vpack.c.bf16 %v2762_v35, %v2746_v22 }
 0x350   : > { %v1322_v16 = vadd.f32 1e-05, %v1306_v37  ;;  %v1307_v44 = vmax.f32 %v1291_v25, 0.0  ;;  %v1292_v45 = vsub.f32 %v1260_v52, %v1276_v34  ;;  %2157 = vrsqrt.f32 %v1321_v9 }
 0x351   : > { %v2903_v27 = vmul.f32 0.00390625, %v1130_v62  ;;  %v1133_v36 = vpop.xlane.xlu1 %1132  ;;  %v1378_v29 = vsub.bf16 %v3105_v3, %v1368_v57 }
 0x352   : > { %2159 = vrsqrt.f32 %v1322_v16  ;;  %v1323_v58 = vadd.f32 1e-05, %v1307_v44  ;;  %v1308_v14 = vmax.f32 %v1292_v45, 0.0  ;;  %v1166_v30 = vmul.f32 0.00390625, %v1133_v36 }
 0x353   : > { %v1227_v15 = vpop.xlane.xlu0 %1226  ;;  %v1277_v21 = vmul.f32 %v2903_v27, %v2903_v27  ;;  %v1369_v44 = vpack.c.bf16 %v1164_v54, %v1163_v40 }
 0x354   : > { %v1324_v39 = vadd.f32 1e-05, %v1308_v14  ;;  %2161 = vrsqrt.f32 %v1323_v58  ;;  %v1261_v60 = vmul.f32 0.00390625, %v1227_v15  ;;  %v1278_v37 = vmul.f32 %v1166_v30, %v1166_v30 }
 0x355   : > { %v1230_v20 = vpop.xlane.xlu1 %1229  ;;  %v3104_v14 = vpack.c.bf16 %v2752_v1, %v2740_v13  ;;  %v3106_v13 = vpack.c.bf16 %v2630_v8, %v2613_v2  ;;  %v1370_v3 = vpack.c.bf16 %v1166_v30, %v2903_v27 }
 0x356   : > { %2163 = vrsqrt.f32 %v1324_v39  ;;  %v1262_v12 = vmul.f32 0.00390625, %v1230_v20  ;;  %v1293_v34 = vsub.f32 %v1261_v60, %v1277_v21 }
 0x357   : > { %v1136_v32 = vpop.xlane.xlu0 %1135  ;;  %v1377_v15 = vsub.bf16 %v3104_v14, %v1368_v57  ;;  %v1379_v22 = vsub.bf16 %v3106_v13, %v1369_v44  ;;  %v2102_v14 = vld [vmem:[%s2291_s20 + $0x14] ss:$8 sps:$4 sm:$0xff]  }
 0x358   : > { %v1294_v33 = vsub.f32 %v1262_v12, %v1278_v37  ;;  %v2907_v47 = vmul.f32 0.00390625, %v1136_v32  ;;  %v1309_v61 = vmax.f32 %v1293_v34, 0.0 }
 0x359   : > { %v1139_v53 = vpop.xlane.xlu1 %1138 }
 0x35a   : > { %v1310_v11 = vmax.f32 %v1294_v33, 0.0  ;;  %v2910_v9 = vmul.f32 0.00390625, %v1139_v53  ;;  %v2158_v25 = vpop.eup %2157  ;;  %v1325_v52 = vadd.f32 1e-05, %v1309_v61  ;;  %v1279_v36 = vmul.f32 %v2907_v47, %v2907_v47 }
 0x35b   : > { %v1233_v62 = vpop.xlane.xlu0 %1232 }
 0x35c   : > { %v2160_v16 = vpop.eup %2159  ;;  %v1326_v45 = vadd.f32 1e-05, %v1310_v11  ;;  %v1263_v58 = vmul.f32 0.00390625, %v1233_v62  ;;  %v1280_v60 = vmul.f32 %v2910_v9, %v2910_v9 }
 0x35d   : > { %v1392_v39 = vpack.c.bf16 %v2160_v16, %v2158_v25  ;;  %v1236_v21 = vpop.xlane.xlu1 %1235  ;;  %v3107_v25 = vpack.c.bf16 %v2639_v50, %v2621_v49 }
 0x35e   : > { %2165 = vrsqrt.f32 %v1326_v45  ;;  %v1295_v40 = vsub.f32 %v1263_v58, %v1279_v36  ;;  %v2162_v54 = vpop.eup %2161  ;;  %v1264_v20 = vmul.f32 0.00390625, %v1236_v21  ;;  %v2100_v58 = vld [vmem:[%s2291_s20 + $0x10] ss:$8 sps:$4 sm:$0xff]  }
 0x35f   : > { %2167 = vrsqrt.f32 %v1325_v52  ;;  %v1142_v37 = vpop.xlane.xlu0 %1141  ;;  %v1401_v12 = vmul.bf16 %v1392_v39, %v1377_v15  ;;  %v1402_v34 = vmul.bf16 %v1392_v39, %v1378_v29  ;;  %v1380_v52 = vsub.bf16 %v3107_v25, %v1369_v44 }
 0x360   : > { %v2164_v32 = vpop.eup %2163  ;;  %v1311_v1 = vmax.f32 %v1295_v40, 0.0  ;;  %v2925_v35 = vmul.f32 0.00390625, %v1142_v37  ;;  %v1296_v57 = vsub.f32 %v1264_v20, %v1280_v60  ;;  %v3108_v44 = vmov 0  }
 0x361   : > { %v1393_v33 = vpack.c.bf16 %v2164_v32, %v2162_v54  ;;  %v1145_v61 = vpop.xlane.xlu1 %1144  ;;  %v1455_v53 = vmul.bf16 %v2874_v55, %v1401_v12  ;;  %v1456_v11 = vmul.bf16 %v2883_v43, %v1402_v34 }
 0x362   : > { %v1327_v62 = vadd.f32 1e-05, %v1311_v1  ;;  %v2932_v16 = vmul.f32 0.00390625, %v1145_v61  ;;  %v1312_v2 = vmax.f32 %v1296_v57, 0.0  ;;  %v1281_v29 = vmul.f32 %v2925_v35, %v2925_v35 }
 0x363   : > { %v1239_v8 = vpop.xlane.xlu0 %1238  ;;  %v1509_v45 = vadd.bf16 %v2886_v31, %v1455_v53  ;;  %v1510_v36 = vadd.bf16 %v2889_v46, %v1456_v11  ;;  %v1403_v15 = vmul.bf16 %v1393_v33, %v1379_v22  ;;  %v1404_v40 = vmul.bf16 %v1393_v33, %v1380_v52 }
 0x364   : > { %v1265_v39 = vmul.f32 0.00390625, %v1239_v8  ;;  %v1328_v49 = vadd.f32 1e-05, %v1312_v2  ;;  %2169 = vrsqrt.f32 %v1327_v62  ;;  %v1282_v54 = vmul.f32 %v2932_v16, %v2932_v16 }
 0x365   : > { %v1242_v50 = vpop.xlane.xlu1 %1241  ;;  %v1525_v21 = vmax.bf16 %v3108_v44, %v1509_v45  ;;  %v1526_v60 = vmax.bf16 %v3108_v44, %v1510_v36  ;;  %v1457_v34 = vmul.bf16 %v2874_v55, %v1403_v15  ;;  %v1458_v57 = vmul.bf16 %v2883_v43, %v1404_v40 }
 0x366   : > { %v1297_v20 = vsub.f32 %v1265_v39, %v1281_v29  ;;  %v1266_v37 = vmul.f32 0.00390625, %v1242_v50  ;;  %2171 = vrsqrt.f32 %v1328_v49  ;;  %v3109_v61 = vpack.c.bf16 %v2674_v26, %v2668_v38  ;;  %v2103_v49 = vld [vmem:[%s2291_s20 + $0x20] ss:$8 sps:$4 sm:$0xff]   ;;  %v2105_v38 = vld [vmem:[%s2291_s20 + $0x24] ss:$8 sps:$4 sm:$0xff]  }
 0x367   : > { %v1148_v12 = vpop.xlane.xlu0 %1147  ;;  %v1637_v27 = vmul.bf16 %v2100_v58, %v1525_v21  ;;  %v1638_v30 = vmul.bf16 %v2102_v14, %v1526_v60  ;;  %v1511_v29 = vadd.bf16 %v2886_v31, %v1457_v34  ;;  %v1512_v39 = vadd.bf16 %v2889_v46, %v1458_v57 }
 0x368   : > { %v2166_v32 = vpop.eup %2165  ;;  %v1313_v13 = vmax.f32 %v1297_v20, 0.0  ;;  %v1298_v22 = vsub.f32 %v1266_v37, %v1282_v54  ;;  %v2946_v1 = vmul.f32 0.00390625, %v1148_v12  ;;  %v1381_v53 = vsub.bf16 %v3109_v61, %v1370_v3 }
 0x369   : > { %v2168_v33 = vpop.eup %2167  ;;  %v1151_v11 = vpop.xlane.xlu1 %1150  ;;  %v1657_v25 = vunpack.c.h.bf16 %v1637_v27  ;;  %v1658_v52 = vunpack.c.h.bf16 %v1638_v30  ;;  %v1655_v62 = vunpack.c.l.bf16 %v1637_v27  ;;  %v1656_v15 = vunpack.c.l.bf16 %v1638_v30 }
 0x36a   : > { %v1394_v2 = vpack.c.bf16 %v2166_v32, %v2168_v33  ;;  %v1329_v8 = vadd.f32 1e-05, %v1313_v13  ;;  %v1314_v45 = vmax.f32 %v1298_v22, 0.0  ;;  %v2952_v36 = vmul.f32 0.00390625, %v1151_v11 }
 0x36b   : > { %v1245_v58 = vpop.xlane.xlu0 %1244  ;;  %v1692_v14 = vadd.f32 %v1658_v52, %v1657_v25  ;;  %v3110_v26 = vpack.c.bf16 %v2679_v10, %v2671_v19  ;;  %v1283_v60 = vmul.f32 %v2946_v1, %v2946_v1  ;;  %v1689_v20 = vadd.f32 %v1656_v15, %v1655_v62 }
 0x36c   : > { %2173 = vrsqrt.f32 %v1329_v8  ;;  %v1330_v21 = vadd.f32 1e-05, %v1314_v45  ;;  %v1267_v40 = vmul.f32 0.00390625, %v1245_v58  ;;  %v1527_v37 = vmax.bf16 %v3108_v44, %v1511_v29 }
 0x36d   : > { %v1382_v50 = vsub.bf16 %v3110_v26, %v1370_v3  ;;  %v1248_v54 = vpop.xlane.xlu1 %1247  ;;  %1693 = vadd.xlane.f32.xlu1 %v1692_v14  ;;  %v1528_v12 = vmax.bf16 %v3108_v44, %v1512_v39  ;;  %v1371_v27 = vpack.c.bf16 %v2910_v9, %v2907_v47  ;;  %v1284_v19 = vmul.f32 %v2952_v36, %v2952_v36 }
 0x36e   : > { %2175 = vrsqrt.f32 %v1330_v21  ;;  %v1268_v10 = vmul.f32 0.00390625, %v1248_v54  ;;  %v1299_v3 = vsub.f32 %v1267_v40, %v1283_v60  ;;  %1690 = vadd.xlane.f32.xlu0 %v1689_v20  ;;  %v1639_v34 = vmul.bf16 %v2103_v49, %v1527_v37  ;;  %v2170_v22 = vpop.eup %2169  ;;  %v2106_v54 = vld [vmem:[%s2291_s20 + $0x30] ss:$8 sps:$4 sm:$0xff]  }
 0x36f   : > { %v1154_v30 = vpop.xlane.xlu0 %1153  ;;  %v1640_v32 = vmul.bf16 %v2105_v38, %v1528_v12  ;;  %v1405_v13 = vmul.bf16 %v1394_v2, %v1381_v53  ;;  %v1406_v61 = vmul.bf16 %v1394_v2, %v1382_v50  ;;  %v3111_v8 = vpack.c.bf16 %v2710_v7, %v2704_v28 }
 0x370   : > { %v1300_v57 = vsub.f32 %v1268_v10, %v1284_v19  ;;  %v2969_v33 = vmul.f32 0.00390625, %v1154_v30  ;;  %v2172_v11 = vpop.eup %2171  ;;  %v1315_v25 = vmax.f32 %v1299_v3, 0.0  ;;  %v1661_v47 = vunpack.c.h.bf16 %v1639_v34  ;;  %v2108_v30 = vld [vmem:[%s2291_s20 + $0x34] ss:$8 sps:$4 sm:$0xff]  }
 0x371   : > { %v1157_v52 = vpop.xlane.xlu1 %1156  ;;  %v1662_v9 = vunpack.c.h.bf16 %v1640_v32  ;;  %v1659_v62 = vunpack.c.l.bf16 %v1639_v34  ;;  %v1383_v45 = vsub.bf16 %v3111_v8, %v1371_v27  ;;  %v1395_v58 = vpack.c.bf16 %v2172_v11, %v2170_v22 }
 0x372   : > { %v1316_v14 = vmax.f32 %v1300_v57, 0.0  ;;  %v2974_v15 = vmul.f32 0.00390625, %v1157_v52  ;;  %v1331_v53 = vadd.f32 1e-05, %v1315_v25  ;;  %v1660_v39 = vunpack.c.l.bf16 %v1640_v32 }
 0x373   : > { %v1698_v29 = vadd.f32 %v1662_v9, %v1661_v47  ;;  %v1251_v49 = vpop.xlane.xlu0 %1250  ;;  %v1459_v2 = vmul.bf16 %v2874_v55, %v1405_v13  ;;  %v1372_v38 = vpack.c.bf16 %v2932_v16, %v2925_v35  ;;  %v1285_v50 = vmul.f32 %v2969_v33, %v2969_v33 }
 0x374   : > { %v1332_v26 = vadd.f32 1e-05, %v1316_v14  ;;  %v1269_v28 = vmul.f32 0.00390625, %v1251_v49  ;;  %2177 = vrsqrt.f32 %v1331_v53  ;;  %v1695_v7 = vadd.f32 %v1660_v39, %v1659_v62  ;;  %v2111_v39 = vld [vmem:[%s2291_s20 + $0x44] ss:$8 sps:$4 sm:$0xff]  }
 0x375   : > { %1699 = vadd.xlane.f32.xlu1 %v1698_v29  ;;  %v1254_v21 = vpop.xlane.xlu1 %1253  ;;  %v1460_v60 = vmul.bf16 %v2883_v43, %v1406_v61  ;;  %v1513_v40 = vadd.bf16 %v2886_v31, %v1459_v2  ;;  %v3112_v37 = vpack.c.bf16 %v2715_v6, %v2707_v56  ;;  %v1286_v16 = vmul.f32 %v2974_v15, %v2974_v15  ;;  %v2109_v29 = vld [vmem:[%s2291_s20 + $0x40] ss:$8 sps:$4 sm:$0xff]  }
 0x376   : > { %v2174_v20 = vpop.eup %2173  ;;  %2179 = vrsqrt.f32 %v1332_v26  ;;  %v1301_v12 = vsub.f32 %v1269_v28, %v1285_v50  ;;  %1696 = vadd.xlane.f32.xlu0 %v1695_v7  ;;  %v1270_v19 = vmul.f32 0.00390625, %v1254_v21  ;;  %v1407_v34 = vmul.bf16 %v1395_v58, %v1383_v45 }
 0x377   : > { %v1384_v35 = vsub.bf16 %v3112_v37, %v1371_v27  ;;  %v1514_v10 = vadd.bf16 %v2889_v46, %v1460_v60  ;;  %v1529_v3 = vmax.bf16 %v3108_v44, %v1513_v40  ;;  %v3113_v13 = vpack.c.bf16 %v2755_v18, %v2743_v17 }
 0x378   : > { %v2176_v32 = vpop.eup %2175  ;;  %v1317_v56 = vmax.f32 %v1301_v12, 0.0  ;;  %v1302_v57 = vsub.f32 %v1270_v19, %v1286_v16  ;;  %v3114_v25 = vpack.c.bf16 %v2765_v51, %v2749_v41  ;;  %v1461_v9 = vmul.bf16 %v2874_v55, %v1407_v34 }
 0x379   : > { %v1385_v22 = vsub.bf16 %v3113_v13, %v1372_v38  ;;  %v1408_v6 = vmul.bf16 %v1395_v58, %v1384_v35  ;;  %v1396_v27 = vpack.c.bf16 %v2176_v32, %v2174_v20  ;;  %v1530_v61 = vmax.bf16 %v3108_v44, %v1514_v10 }
 0x37a   : > { %v1641_v11 = vmul.bf16 %v2106_v54, %v1529_v3  ;;  %v1386_v52 = vsub.bf16 %v3114_v25, %v1372_v38  ;;  %v1333_v47 = vadd.f32 1e-05, %v1317_v56  ;;  %v1318_v17 = vmax.f32 %v1302_v57, 0.0  ;;  %v2112_v3 = vld [vmem:[%s2291_s20 + $0x50] ss:$8 sps:$4 sm:$0xff]  }
 0x37b   : > { %v1462_v62 = vmul.bf16 %v2883_v43, %v1408_v6  ;;  %v1642_v18 = vmul.bf16 %v2108_v30, %v1530_v61  ;;  %v1373_v58 = vpack.c.bf16 %v2952_v36, %v2946_v1  ;;  %v1515_v14 = vadd.bf16 %v2886_v31, %v1461_v9  ;;  %v2114_v30 = vld [vmem:[%s2291_s20 + $0x54] ss:$8 sps:$4 sm:$0xff]  }
 0x37c   : > { %v1665_v8 = vunpack.c.h.bf16 %v1641_v11  ;;  %v1663_v45 = vunpack.c.l.bf16 %v1641_v11  ;;  %v1409_v41 = vmul.bf16 %v1396_v27, %v1385_v22  ;;  %v1334_v51 = vadd.f32 1e-05, %v1318_v17 }
 0x37d   : > { %v1516_v53 = vadd.bf16 %v2889_v46, %v1462_v62  ;;  %v1666_v49 = vunpack.c.h.bf16 %v1642_v18  ;;  %v1664_v2 = vunpack.c.l.bf16 %v1642_v18  ;;  %v1410_v38 = vmul.bf16 %v1396_v27, %v1386_v52 }
 0x37e   : > { %2181 = vrsqrt.f32 %v1333_v47  ;;  %v1531_v26 = vmax.bf16 %v3108_v44, %v1515_v14  ;;  %v1463_v28 = vmul.bf16 %v2874_v55, %v1409_v41  ;;  %v2178_v1 = vpop.eup %2177  ;;  %v3115_v40 = vpack.c.bf16 %v2805_v4, %v2798_v23 }
 0x37f   : > { %v1532_v50 = vmax.bf16 %v3108_v44, %v1516_v53  ;;  %2183 = vrsqrt.f32 %v1334_v51  ;;  %v1704_v36 = vadd.f32 %v1666_v49, %v1665_v8  ;;  %v1701_v7 = vadd.f32 %v1664_v2, %v1663_v45  ;;  %v2117_v8 = vld [vmem:[%s2291_s20 + $0x64] ss:$8 sps:$4 sm:$0xff]  }
 0x380   : > { %v1464_v21 = vmul.bf16 %v2883_v43, %v1410_v38  ;;  %v2180_v60 = vpop.eup %2179  ;;  %v1387_v54 = vsub.bf16 %v3115_v40, %v1373_v58  ;;  %v1643_v20 = vmul.bf16 %v2109_v29, %v1531_v26  ;;  %v1517_v35 = vadd.bf16 %v2886_v31, %v1463_v28 }
 0x381   : > { %v1644_v37 = vmul.bf16 %v2111_v39, %v1532_v50  ;;  %v3116_v16 = vpack.c.bf16 %v2810_v0, %v2801_v59  ;;  %v1397_v19 = vpack.c.bf16 %v2180_v60, %v2178_v1  ;;  %1705 = vadd.xlane.f32.xlu1 %v1704_v36  ;;  %1702 = vadd.xlane.f32.xlu0 %v1701_v7 }
 0x382   : > { %v1518_v10 = vadd.bf16 %v2889_v46, %v1464_v21  ;;  %v1669_v34 = vunpack.c.h.bf16 %v1643_v20  ;;  %v1667_v13 = vunpack.c.l.bf16 %v1643_v20  ;;  %v1533_v23 = vmax.bf16 %v3108_v44, %v1517_v35  ;;  %v2120_v20 = vld [vmem:[%s2291_s20 + $0x74] ss:$8 sps:$4 sm:$0xff]  }
 0x383   : > { %v1388_v12 = vsub.bf16 %v3116_v16, %v1373_v58  ;;  %v1670_v32 = vunpack.c.h.bf16 %v1644_v37  ;;  %v1668_v4 = vunpack.c.l.bf16 %v1644_v37  ;;  %v1411_v56 = vmul.bf16 %v1397_v19, %v1387_v54  ;;  %v2118_v54 = vld [vmem:[%s2291_s20 + $0x70] ss:$8 sps:$4 sm:$0xff]  }
 0x384   : > { %v1534_v22 = vmax.bf16 %v3108_v44, %v1518_v10  ;;  %v1374_v59 = vpack.c.bf16 %v2974_v15, %v2969_v33  ;;  %v1645_v57 = vmul.bf16 %v2112_v3, %v1533_v23  ;;  %v2115_v15 = vld [vmem:[%s2291_s20 + $0x60] ss:$8 sps:$4 sm:$0xff]   ;;  %v3117_v58 = vpack.c.bf16 %v2835_v48, %v2828_v24 }
 0x385   : > { %v1412_v6 = vmul.bf16 %v1397_v19, %v1388_v12  ;;  %v1710_v0 = vadd.f32 %v1670_v32, %v1669_v34  ;;  %v1707_v27 = vadd.f32 %v1668_v4, %v1667_v13  ;;  %v1465_v11 = vmul.bf16 %v2874_v55, %v1411_v56 }
 0x386   : > { %v1646_v61 = vmul.bf16 %v2114_v30, %v1534_v22  ;;  %v1673_v52 = vunpack.c.h.bf16 %v1645_v57  ;;  %v1671_v9 = vunpack.c.l.bf16 %v1645_v57  ;;  %v1389_v14 = vsub.bf16 %v3117_v58, %v1374_v59 }
 0x387   : > { %v1466_v25 = vmul.bf16 %v2883_v43, %v1412_v6  ;;  %1711 = vadd.xlane.f32.xlu1 %v1710_v0  ;;  %1708 = vadd.xlane.f32.xlu0 %v1707_v27  ;;  %v1519_v18 = vadd.bf16 %v2886_v31, %v1465_v11  ;;  %v3118_v39 = vpack.c.bf16 %v2840_v42, %v2831_v63 }
 0x388   : > { %v1674_v47 = vunpack.c.h.bf16 %v1646_v61  ;;  %v1672_v62 = vunpack.c.l.bf16 %v1646_v61  ;;  %v2182_v17 = vpop.eup %2181 }
 0x389   : > { %v1520_v33 = vadd.bf16 %v2889_v46, %v1466_v25  ;;  %v2184_v45 = vpop.eup %2183  ;;  %v1390_v41 = vsub.bf16 %v3118_v39, %v1374_v59  ;;  %v1535_v49 = vmax.bf16 %v3108_v44, %v1519_v18 }
 0x38a   : > { %v1716_v53 = vadd.f32 %v1674_v47, %v1673_v52  ;;  %v1713_v29 = vadd.f32 %v1672_v62, %v1671_v9  ;;  %v1398_v51 = vpack.c.bf16 %v2184_v45, %v2182_v17 }
 0x38b   : > { %v1536_v2 = vmax.bf16 %v3108_v44, %v1520_v33  ;;  %v1647_v38 = vmul.bf16 %v2115_v15, %v1535_v49 }
 0x38c   : > { %1717 = vadd.xlane.f32.xlu1 %v1716_v53  ;;  %1714 = vadd.xlane.f32.xlu0 %v1713_v29  ;;  %v1413_v50 = vmul.bf16 %v1398_v51, %v1389_v14  ;;  %v1414_v48 = vmul.bf16 %v1398_v51, %v1390_v41 }
 0x38d   : > { %v1648_v26 = vmul.bf16 %v2117_v8, %v1536_v2  ;;  %v1677_v24 = vunpack.c.h.bf16 %v1647_v38  ;;  %v1675_v1 = vunpack.c.l.bf16 %v1647_v38 }
 0x38e   : > { %v1467_v63 = vmul.bf16 %v2874_v55, %v1413_v50  ;;  %v1468_v42 = vmul.bf16 %v2883_v43, %v1414_v48 }
 0x38f   : > { %v1678_v28 = vunpack.c.h.bf16 %v1648_v26  ;;  %v1676_v36 = vunpack.c.l.bf16 %v1648_v26 }
 0x390   : > { %v1521_v60 = vadd.bf16 %v2886_v31, %v1467_v63  ;;  %v1522_v40 = vadd.bf16 %v2889_v46, %v1468_v42  ;;  %v3119_v31 = vlaneseq }
 0x391   : > { %v1722_v7 = vadd.f32 %v1678_v28, %v1677_v24  ;;  %v1719_v21 = vadd.f32 %v1676_v36, %v1675_v1 }
 0x392   : > { %v1537_v37 = vmax.bf16 %v3108_v44, %v1521_v60  ;;  %v1538_v35 = vmax.bf16 %v3108_v44, %v1522_v40  ;;  %v3048_v46 = vand.u32 127, %v3119_v31 }
 0x393   : > { %1723 = vadd.xlane.f32.xlu1 %v1722_v7  ;;  %1720 = vadd.xlane.f32.xlu0 %v1719_v21 }
 0x394   : > { %v1649_v16 = vmul.bf16 %v2118_v54, %v1537_v37  ;;  %v1650_v12 = vmul.bf16 %v2120_v20, %v1538_v35  ;;  %v1753_v34 = vadd.s32 4294967288, %v3048_v46  ;;  %v1760_v13 = vadd.s32 4294967280, %v3048_v46 }
 0x395   : > { %v1751_v23 = vsub.s32 %v3048_v46, %v2479_v5  ;;  %v1767_v22 = vadd.s32 4294967272, %v3048_v46  ;;  %v1774_v59 = vadd.s32 4294967264, %v3048_v46  ;;  %v1781_v27 = vadd.s32 4294967256, %v3048_v46 }
 0x396   : > { %v1681_v19 = vunpack.c.h.bf16 %v1649_v16  ;;  %v1682_v55 = vunpack.c.h.bf16 %v1650_v12  ;;  %v1679_v10 = vunpack.c.l.bf16 %v1649_v16  ;;  %v1680_v43 = vunpack.c.l.bf16 %v1650_v12 }
 0x397   : > { %v1756_v44 = vsub.s32 %v1753_v34, %v2479_v5  ;;  %v1763_v6 = vsub.s32 %v1760_v13, %v2479_v5  ;;  %v1770_v11 = vsub.s32 %v1767_v22, %v2479_v5  ;;  %v1777_v52 = vsub.s32 %v1774_v59, %v2479_v5 }
 0x398   : > { %v1728_v3 = vadd.f32 %v1682_v55, %v1681_v19  ;;  %v1725_v30 = vadd.f32 %v1680_v43, %v1679_v10  ;;  %v1788_v47 = vadd.s32 4294967248, %v3048_v46  ;;  %v1784_v62 = vsub.s32 %v1781_v27, %v2479_v5 }
 0x399   : > { %v1795_v33 = vadd.s32 4294967240, %v3048_v46  ;;  %v1802_v14 = vadd.s32 4294967232, %v3048_v46  ;;  %v1809_v51 = vadd.s32 4294967224, %v3048_v46  ;;  %v1816_v50 = vadd.s32 4294967216, %v3048_v46 }
 0x39a   : > { %1729 = vadd.xlane.f32.xlu1 %v1728_v3  ;;  %1726 = vadd.xlane.f32.xlu0 %v1725_v30  ;;  %v1791_v58 = vsub.s32 %v1788_v47, %v2479_v5  ;;  %v1823_v36 = vadd.s32 4294967208, %v3048_v46  ;;  %v1830_v60 = vadd.s32 4294967200, %v3048_v46  ;;  %v1837_v35 = vadd.s32 4294967192, %v3048_v46 }
 0x39b   : > { %v1798_v41 = vsub.s32 %v1795_v33, %v2479_v5  ;;  %v1805_v26 = vsub.s32 %v1802_v14, %v2479_v5  ;;  %v1812_v1 = vsub.s32 %v1809_v51, %v2479_v5  ;;  %v1819_v21 = vsub.s32 %v1816_v50, %v2479_v5 }
 0x39c   : > { %v1826_v37 = vsub.s32 %v1823_v36, %v2479_v5  ;;  %v1833_v55 = vsub.s32 %v1830_v60, %v2479_v5  ;;  %v1851_v43 = vadd.s32 4294967176, %v3048_v46  ;;  %v1844_v3 = vadd.s32 4294967184, %v3048_v46 }
 0x39d   : > { %v1840_v34 = vsub.s32 %v1837_v35, %v2479_v5 }
 0x3dc   : > { %v1685_v32 = vpop.xlane.xlu0 %1684  ;;  %v1688_v4 = vpop.xlane.xlu1 %1687 }
 0x3dd   : > { %v1757_v57 = vrot.slane %v1688_v4, %v1756_v44  ;;  %v1752_v61 = vrot.slane %v1685_v32, %v1751_v23  ;;  %v1854_v44 = vsub.s32 %v1851_v43, %v2479_v5  ;;  %v1847_v23 = vsub.s32 %v1844_v3, %v2479_v5 }
 0x3df   : > { %v1759_v17 = vsel %vm1758_vm0, %v1757_v57, %v1752_v61 }
 0x3fa   : > { %v1694_v0 = vpop.xlane.xlu1 %1693 }
 0x3fb   : > { %v1691_v56 = vpop.xlane.xlu0 %1690  ;;  %v1771_v18 = vrot.slane %v1694_v0, %v1770_v11 }
 0x3fc   : > { %v1764_v25 = vrot.slane %v1691_v56, %v1763_v6 }
 0x3fe   : > { %v1766_v15 = vsel %vm1765_vm1, %v1764_v25, %v1759_v17 }
 0x3ff   : > { %v1773_v39 = vsel %vm1772_vm2, %v1771_v18, %v1766_v15 }
 0x402   : > { %v1700_v8 = vpop.xlane.xlu1 %1699 }
 0x403   : > { %v1697_v9 = vpop.xlane.xlu0 %1696  ;;  %v1785_v29 = vrot.slane %v1700_v8, %v1784_v62 }
 0x404   : > { %v1778_v45 = vrot.slane %v1697_v9, %v1777_v52 }
 0x406   : > { %v1780_v49 = vsel %vm1779_vm3, %v1778_v45, %v1773_v39 }
 0x407   : > { %v1787_v28 = vsel %vm1786_vm4, %v1785_v29, %v1780_v49 }
 0x40e   : > { %v1703_v53 = vpop.xlane.xlu0 %1702  ;;  %v1706_v2 = vpop.xlane.xlu1 %1705 }
 0x40f   : > { %v1792_v38 = vrot.slane %v1703_v53, %v1791_v58  ;;  %v1799_v24 = vrot.slane %v1706_v2, %v1798_v41 }
 0x411   : > { %v1794_v63 = vsel %vm1793_vm5, %v1792_v38, %v1787_v28 }
 0x412   : > { %v1801_v20 = vsel %vm1800_vm6, %v1799_v24, %v1794_v63 }
 0x414   : > { %v1709_v48 = vpop.xlane.xlu0 %1708  ;;  %v1712_v42 = vpop.xlane.xlu1 %1711 }
 0x415   : > { %v1806_v7 = vrot.slane %v1709_v48, %v1805_v26  ;;  %v1813_v54 = vrot.slane %v1712_v42, %v1812_v1 }
 0x417   : > { %v1808_v16 = vsel %vm1807_vm7, %v1806_v7, %v1801_v20 }
 0x418   : > { %v1815_v31 = vsel %vm1814_vm8, %v1813_v54, %v1808_v16 }
 0x419   : > { %v1715_v40 = vpop.xlane.xlu0 %1714  ;;  %v1718_v12 = vpop.xlane.xlu1 %1717 }
 0x41a   : > { %v1820_v19 = vrot.slane %v1715_v40, %v1819_v21  ;;  %v1827_v30 = vrot.slane %v1718_v12, %v1826_v37 }
 0x41c   : > { %v1822_v32 = vsel %vm1821_vm9, %v1820_v19, %v1815_v31 }
 0x41d   : > { %v1829_v56 = vsel %vm1828_vm10, %v1827_v30, %v1822_v32 }
 0x420   : > { %v1721_v10 = vpop.xlane.xlu0 %1720  ;;  %v1724_v13 = vpop.xlane.xlu1 %1723 }
 0x421   : > { %v1834_v4 = vrot.slane %v1721_v10, %v1833_v55  ;;  %v1841_v22 = vrot.slane %v1724_v13, %v1840_v34 }
 0x423   : > { %v1836_v6 = vsel %vm1835_vm11, %v1834_v4, %v1829_v56 }
 0x424   : > { %v1843_v57 = vsel %vm1842_vm12, %v1841_v22, %v1836_v6 }
 0x427   : > { %v1730_v46 = vpop.xlane.xlu1 %1729  ;;  %v1727_v59 = vpop.xlane.xlu0 %1726 }
 0x428   : > { %v1855_v0 = vrot.slane %v1730_v46, %v1854_v44  ;;  %v1848_v27 = vrot.slane %v1727_v59, %v1847_v23 }
 0x42a   : > { %v1850_v61 = vsel %vm1849_vm13, %v1848_v27, %v1843_v57 }
 0x42b   : > { %v1857_v11 = vsel %vm1856_vm14, %v1855_v0, %v1850_v61 }
 0x42c   : > { %1859 = vst [vmem:[%s382_s15] sm:$0x1] %v1857_v11 }
 0x42d PF: > { %s20_s13 = sadd.s32 1, %s2191_s13  }
 0x42e   : > { %p17_p5 = scmp.ge.s32.totalorder %s20_s13, 4  }
 0x430   :  { %19 = sbr.rel (!%p17_p5) target bundleno = 1 (0x1), region = 93 }

</bundles_post_ra>
